<compile_context>
chip_gen: v5e
topology: v5e:2x2
jax: 0.10.0
libtpu: 0.0.40
codegen_flags: <defaults>
</compile_context>

<pallas_src>
import jax
import jax.numpy as jnp
from jax.experimental import pallas as pl
from jax.experimental.pallas import tpu as pltpu

EPS = 1e-5


# ----------------------------------------------------------------------------
# One-time parameter packing (plain JAX, outside the kernels)
# ----------------------------------------------------------------------------
def pack_up_weight(wt, W1):
    """ConvTranspose2d weight (Cin, Ch, 2, 2) -> (W1*Cin, 2*W1*2*Ch) block-diagonal
    slab: one matmul over an (H1, W1*Cin) row maps straight to the upsampled image
    in coarse-row layout (row a holds fine rows 2a and 2a+1); no pixel-shuffle needed."""
    Cin, Ch = wt.shape[0], wt.shape[1]
    eye = jnp.eye(W1, dtype=wt.dtype)
    # dims: (b_in, c, ky, b, kx, ch); block diagonal in b
    w6 = jnp.einsum("Bb,cdyx->Bcybxd", eye, wt)
    return w6.reshape(W1 * Cin, 2 * W1 * 2 * Ch)


def pack_conv_coarse(w_h, W):
    """3x3 conv weight in HWIO (3,3,C,Cout) -> (3, 2*W*C, 2*W*Cout) banded matrices for
    the coarse-row layout.  dx and the horizontal zero-padding are folded into the band;
    dy becomes 3 matmuls over vertically shifted coarse rows."""
    dy = jnp.arange(3)[:, None, None, None]
    r_in = jnp.arange(2)[None, :, None, None]
    r_out = jnp.arange(2)[None, None, :, None]
    fy = jnp.arange(3)[None, None, None, :]
    # fine-row offset selector: fy = 2*dy + r_in - r_out - 1 must land in {0,1,2}
    A = (fy == 2 * dy + r_in - r_out - 1).astype(jnp.float32)          # (3,2,2,3)
    J = jnp.arange(W)[:, None]
    j = jnp.arange(W)[None, :]
    M = jnp.stack([(J == j + fx - 1) for fx in range(3)], 0).astype(jnp.float32)  # (3,W,W)
    C, Cout = w_h.shape[2], w_h.shape[3]
    Wc = jnp.einsum("dRrf,xJj,fxco->dRJcrjo", A, M, w_h)
    return Wc.reshape(3, 2 * W * C, 2 * W * Cout)


def pack_up_params(raw, W1):
    """Repack PyTorch-layout parameters into matmul-friendly slabs (done once)."""
    Ch = raw["up_w"].shape[1]
    W = 2 * W1
    w1_h = jnp.transpose(raw["w1"], (2, 3, 1, 0))   # OIHW -> HWIO (3,3,2*Ch,Cout)
    w2_h = jnp.transpose(raw["w2"], (2, 3, 1, 0))
    # conv1 input lanes are [x2 block | upsampled-x1 block] == torch.cat([x2, x1]) order
    w1row = jnp.concatenate(
        [pack_conv_coarse(w1_h[:, :, :Ch, :], W),
         pack_conv_coarse(w1_h[:, :, Ch:, :], W)], axis=1)
    return dict(
        wup=pack_up_weight(raw["up_w"], W1),
        bup=jnp.tile(raw["up_b"], 2 * W1 * 2)[None, :],
        w1row=w1row,
        b1row=jnp.tile(raw["b1"], 2 * W)[None, :],
        w2row=pack_conv_coarse(w2_h, W),
        b2row=jnp.tile(raw["b2"], 2 * W)[None, :],
        g1=raw["g1"], be1=raw["be1"], g2=raw["g2"], be2=raw["be2"],
    )


# ----------------------------------------------------------------------------
# Kernel A: ConvTranspose2d (one matmul) + channel-concat + Conv1 (3 banded matmuls)
#           + per-batch partial BN1 statistics.   All I/O rows are 128 lanes wide.
# ----------------------------------------------------------------------------
def up_conv1_kernel(x1_ref, x2_ref, wup_ref, bup_ref, w1_ref, b1_ref,
                    y1_ref, s1_ref, q1_ref):
    Hc = x1_ref.shape[1]                       # coarse rows (= H/2)
    Nw = y1_ref.shape[2]                       # 2*W*Cout (lane-dense output width)

    # ConvTranspose2d(k=2,s=2): all 4 taps in ONE MXU matmul; output already in
    # coarse-row layout, so no pixel-shuffle relayout is needed.
    up = (jnp.dot(x1_ref[0], wup_ref[...], preferred_element_type=jnp.float32)
          + bup_ref[...])                      # (Hc, 2*W*Ch)

    # torch.cat([x2, x1_up], dim=1) fused in VMEM (never materialized in HBM)
    xin = jnp.concatenate([x2_ref[0], up], axis=-1)            # (Hc, 4*W*Ch)

    # zero padding fused: vertical pad = in-register zero rows,
    # horizontal pad already folded into the banded weights
    zrow = jnp.zeros((1, xin.shape[1]), jnp.float32)
    xpad = jnp.concatenate([zrow, xin, zrow], axis=0)          # (Hc+2, 4*W*Ch)

    # Conv2d 3x3: 3 row-banded matmuls (dx folded into the contraction)
    acc = jnp.zeros((Hc, Nw), jnp.float32)
    for dy in range(3):
        acc = acc + jnp.dot(xpad[dy:dy + Hc, :], w1_ref[dy],
                            preferred_element_type=jnp.float32)
    acc = acc + b1_ref[...]                                    # bias hoisted out of loop

    y1_ref[0] = acc                                            # lane-dense store (128)
    # per-batch partial BN stats -> grid stays 'parallel' (both v7x TensorCores usable)
    s1_ref[0] = jnp.sum(acc, axis=0, keepdims=True)
    q1_ref[0] = jnp.sum(acc * acc, axis=0, keepdims=True)


def _up_conv1_call(x1r, x2r, wup, bup, w1row, b1row):
    N, H1, WC1 = x1r.shape
    _, _, WCh2 = x2r.shape
    Nw = w1row.shape[-1]
    return pl.pallas_call(
        up_conv1_kernel,
        out_shape=(
            jax.ShapeDtypeStruct((N, H1, Nw), jnp.float32),
            jax.ShapeDtypeStruct((N, 1, Nw), jnp.float32),
            jax.ShapeDtypeStruct((N, 1, Nw), jnp.float32),
        ),
        grid_spec=pltpu.PrefetchScalarGridSpec(
            num_scalar_prefetch=0,
            grid=(N,),
            in_specs=[
                pl.BlockSpec((1, H1, WC1), lambda n: (n, 0, 0)),
                pl.BlockSpec((1, H1, WCh2), lambda n: (n, 0, 0)),
                pl.BlockSpec(wup.shape, lambda n: (0, 0)),
                pl.BlockSpec(bup.shape, lambda n: (0, 0)),
                pl.BlockSpec(w1row.shape, lambda n: (0, 0, 0)),
                pl.BlockSpec(b1row.shape, lambda n: (0, 0)),
            ],
            out_specs=[
                pl.BlockSpec((1, H1, Nw), lambda n: (n, 0, 0)),
                pl.BlockSpec((1, 1, Nw), lambda n: (n, 0, 0)),
                pl.BlockSpec((1, 1, Nw), lambda n: (n, 0, 0)),
            ],
        ),
        compiler_params=pltpu.CompilerParams(dimension_semantics=("parallel",)),
    )(x1r, x2r, wup, bup, w1row, b1row)


# ----------------------------------------------------------------------------
# Kernel B: BN1(scale/shift)+ReLU prologue fused into Conv2 (3 banded matmuls)
#           + per-batch partial BN2 statistics.
# ----------------------------------------------------------------------------
def bn1_conv2_kernel(y1_ref, sc_ref, sh_ref, w2_ref, b2_ref,
                     y2_ref, s2_ref, q2_ref):
    Hc = y1_ref.shape[1]
    Nw = y2_ref.shape[2]

    # BN1 (precomputed per-channel scale/shift, tiled to lanes) + ReLU, fused in-VMEM
    h = jnp.maximum(y1_ref[0] * sc_ref[...] + sh_ref[...], 0.0)

    zrow = jnp.zeros((1, h.shape[1]), jnp.float32)
    xpad = jnp.concatenate([zrow, h, zrow], axis=0)

    acc = jnp.zeros((Hc, Nw), jnp.float32)
    for dy in range(3):
        acc = acc + jnp.dot(xpad[dy:dy + Hc, :], w2_ref[dy],
                            preferred_element_type=jnp.float32)
    acc = acc + b2_ref[...]

    y2_ref[0] = acc
    s2_ref[0] = jnp.sum(acc, axis=0, keepdims=True)
    q2_ref[0] = jnp.sum(acc * acc, axis=0, keepdims=True)


def _bn1_conv2_call(y1, sc1, sh1, w2row, b2row):
    N, H1, Nw = y1.shape
    return pl.pallas_call(
        bn1_conv2_kernel,
        out_shape=(
            jax.ShapeDtypeStruct((N, H1, Nw), jnp.float32),
            jax.ShapeDtypeStruct((N, 1, Nw), jnp.float32),
            jax.ShapeDtypeStruct((N, 1, Nw), jnp.float32),
        ),
        grid_spec=pltpu.PrefetchScalarGridSpec(
            num_scalar_prefetch=0,
            grid=(N,),
            in_specs=[
                pl.BlockSpec((1, H1, Nw), lambda n: (n, 0, 0)),
                pl.BlockSpec(sc1.shape, lambda n: (0, 0)),
                pl.BlockSpec(sh1.shape, lambda n: (0, 0)),
                pl.BlockSpec(w2row.shape, lambda n: (0, 0, 0)),
                pl.BlockSpec(b2row.shape, lambda n: (0, 0)),
            ],
            out_specs=[
                pl.BlockSpec((1, H1, Nw), lambda n: (n, 0, 0)),
                pl.BlockSpec((1, 1, Nw), lambda n: (n, 0, 0)),
                pl.BlockSpec((1, 1, Nw), lambda n: (n, 0, 0)),
            ],
        ),
        compiler_params=pltpu.CompilerParams(dimension_semantics=("parallel",)),
    )(y1, sc1, sh1, w2row, b2row)


# ----------------------------------------------------------------------------
# Full `Up` forward (bilinear=False branch)
# ----------------------------------------------------------------------------
@jax.jit
def up_forward(x1_nchw, x2_nchw, packed):
    N, Cin, H1, W1 = x1_nchw.shape
    _, Ch, H, W = x2_nchw.shape
    Cout = packed["g1"].shape[0]
    cnt = N * H * W

    # NCHW -> NHWC -> lane-dense slabs (pure layout glue; the reshapes are free)
    x1r = jnp.transpose(x1_nchw, (0, 2, 3, 1)).astype(jnp.float32).reshape(N, H1, W1 * Cin)
    x2r = jnp.transpose(x2_nchw, (0, 2, 3, 1)).astype(jnp.float32).reshape(N, H1, 2 * W * Ch)

    # Kernel A: upconv + concat + conv1 + per-batch BN1 partial stats
    y1, s1, q1 = _up_conv1_call(x1r, x2r, packed["wup"], packed["bup"],
                                packed["w1row"], packed["b1row"])

    # BN1 batch statistics (tiny per-channel reduction)
    sum1 = s1.sum(axis=(0, 1)).reshape(2 * W, Cout).sum(axis=0)
    ssq1 = q1.sum(axis=(0, 1)).reshape(2 * W, Cout).sum(axis=0)
    mean1 = sum1 / cnt
    var1 = ssq1 / cnt - mean1 * mean1                 # biased variance (PyTorch norm)
    scale1 = packed["g1"] * jax.lax.rsqrt(var1 + EPS)
    shift1 = packed["be1"] - mean1 * scale1
    sc1 = jnp.tile(scale1, 2 * W)[None, :]
    sh1 = jnp.tile(shift1, 2 * W)[None, :]

    # Kernel B: BN1+ReLU prologue + conv2 + per-batch BN2 partial stats
    y2, s2, q2 = _bn1_conv2_call(y1, sc1, sh1, packed["w2row"], packed["b2row"])

    # BN2 + ReLU fused by XLA into the final reshape/transpose pass
    sum2 = s2.sum(axis=(0, 1)).reshape(2 * W, Cout).sum(axis=0)
    ssq2 = q2.sum(axis=(0, 1)).reshape(2 * W, Cout).sum(axis=0)
    mean2 = sum2 / cnt
    var2 = ssq2 / cnt - mean2 * mean2
    scale2 = packed["g2"] * jax.lax.rsqrt(var2 + EPS)
    shift2 = packed["be2"] - mean2 * scale2
    out = jnp.maximum(y2.reshape(N, H, W, Cout) * scale2 + shift2, 0.0)
    return jnp.transpose(out, (0, 3, 1, 2))           # back to NCHW


# ----------------------------------------------------------------------------
# Pure-JAX reference (mirrors PyTorch semantics) for validation
# ----------------------------------------------------------------------------
def ref_up_forward(x1_nchw, x2_nchw, raw):
    x1 = jnp.transpose(x1_nchw, (0, 2, 3, 1)).astype(jnp.float32)   # NHWC
    x2 = jnp.transpose(x2_nchw, (0, 2, 3, 1)).astype(jnp.float32)
    N, H1, W1, Cin = x1.shape
    Ch = raw["up_w"].shape[1]
    H, W = 2 * H1, 2 * W1

    up = jnp.zeros((N, H, W, Ch), jnp.float32)
    for ky in range(2):
        for kx in range(2):
            v = jnp.einsum("nhwc,cd->nhwd", x1, raw["up_w"][:, :, ky, kx])
            up = up.at[:, ky::2, kx::2, :].set(v + raw["up_b"])
    x = jnp.concatenate([x2, up], axis=-1)

    def conv_bn_relu(xx, w_oihw, b, g, be):
        w = jnp.transpose(w_oihw, (2, 3, 1, 0))       # HWIO
        xp = jnp.pad(xx, ((0, 0), (1, 1), (1, 1), (0, 0)))
        Hh, Ww = xx.shape[1], xx.shape[2]
        out = jnp.zeros((xx.shape[0], Hh, Ww, w.shape[-1]), jnp.float32)
        for dy in range(3):
            for dx in range(3):
                out = out + jnp.einsum("nhwc,cd->nhwd",
                                       xp[:, dy:dy + Hh, dx:dx + Ww, :], w[dy, dx])
        out = out + b
        mean = out.mean(axis=(0, 1, 2))
        var = out.var(axis=(0, 1, 2))
        return jnp.maximum((out - mean) / jnp.sqrt(var + EPS) * g + be, 0.0)

    h1 = conv_bn_relu(x, raw["w1"], raw["b1"], raw["g1"], raw["be1"])
    h2 = conv_bn_relu(h1, raw["w2"], raw["b2"], raw["g2"], raw["be2"])
    return jnp.transpose(h2, (0, 3, 1, 2))


# ----------------------------------------------------------------------------
if __name__ == "__main__":
    # Up(in_channels=8, out_channels=4, bilinear=False)
    in_channels, out_channels = 8, 4
    half = in_channels // 2
    N, H1, W1 = 2, 8, 8                      # x1: coarse feature map
    H, W = 2 * H1, 2 * W1                    # x2: skip connection (16x16)

    key = jax.random.PRNGKey(0)
    ks = jax.random.split(key, 8)

    # PyTorch-layout parameters
    raw = {
        "up_w": jax.random.normal(ks[0], (in_channels, half, 2, 2), jnp.float32) * 0.2,
        "up_b": jax.random.normal(ks[1], (half,), jnp.float32) * 0.1,
        "w1": jax.random.normal(ks[2], (out_channels, in_channels, 3, 3), jnp.float32) * 0.2,
        "b1": jax.random.normal(ks[3], (out_channels,), jnp.float32) * 0.1,
        "g1": jnp.ones((out_channels,), jnp.float32),
        "be1": jnp.zeros((out_channels,), jnp.float32),
        "w2": jax.random.normal(ks[4], (out_channels, out_channels, 3, 3), jnp.float32) * 0.2,
        "b2": jax.random.normal(ks[5], (out_channels,), jnp.float32) * 0.1,
        "g2": jnp.ones((out_channels,), jnp.float32),
        "be2": jnp.zeros((out_channels,), jnp.float32),
    }

    x1 = jax.random.normal(ks[6], (N, in_channels, H1, W1), jnp.float32)   # NCHW
    x2 = jax.random.normal(ks[7], (N, half, H, W), jnp.float32)            # NCHW

    packed = pack_up_params(raw, W1)

    out = jax.block_until_ready(up_forward(x1, x2, packed))
    ref = jax.block_until_ready(ref_up_forward(x1, x2, raw))

    assert out.shape == (N, out_channels, H, W), out.shape
    err = float(jnp.max(jnp.abs(out - ref)))
    assert jnp.allclose(out, ref, rtol=1e-3, atol=1e-3), err
    print("KERNEL_OK")
</pallas_src>

<mosaic_0001>
module attributes {stable_mosaic.version = 11 : i64} {
  func.func @up_conv1_kernel(%arg0: i32, %arg1: memref<1x8x64xf32, #tpu.memory_space<vmem>>, %arg2: memref<1x8x128xf32, #tpu.memory_space<vmem>>, %arg3: memref<64x128xf32, #tpu.memory_space<vmem>>, %arg4: memref<1x128xf32, #tpu.memory_space<vmem>>, %arg5: memref<3x256x128xf32, #tpu.memory_space<vmem>>, %arg6: memref<1x128xf32, #tpu.memory_space<vmem>>, %arg7: memref<1x8x128xf32, #tpu.memory_space<vmem>>, %arg8: memref<1x1x128xf32, #tpu.memory_space<vmem>>, %arg9: memref<1x1x128xf32, #tpu.memory_space<vmem>>) attributes {dimension_semantics = [#tpu.dimension_semantics<parallel>], iteration_bounds = array<i64: 2>, scalar_prefetch = 0 : i64, scratch_operands = 0 : i64, tpu.core_type = #tpu.core_type<tc>, window_params = [{transform_indices = @transform_0, window_bounds = array<i64: 1, 8, 64>}, {transform_indices = @transform_1, window_bounds = array<i64: 1, 8, 128>}, {pipeline_mode = #tpu.pipeline_mode<synchronous>, transform_indices = @transform_2, window_bounds = array<i64: 64, 128>}, {pipeline_mode = #tpu.pipeline_mode<synchronous>, transform_indices = @transform_3, window_bounds = array<i64: 1, 128>}, {pipeline_mode = #tpu.pipeline_mode<synchronous>, transform_indices = @transform_4, window_bounds = array<i64: 3, 256, 128>}, {pipeline_mode = #tpu.pipeline_mode<synchronous>, transform_indices = @transform_5, window_bounds = array<i64: 1, 128>}, {transform_indices = @transform_6, window_bounds = array<i64: 1, 8, 128>}, {transform_indices = @transform_7, window_bounds = array<i64: 1, 1, 128>}, {transform_indices = @transform_8, window_bounds = array<i64: 1, 1, 128>}]} {
    %c0 = arith.constant 0 : index
    %c0_0 = arith.constant 0 : index
    %c0_1 = arith.constant 0 : index
    %0 = vector.load %arg1[%c0, %c0_0, %c0_1] : memref<1x8x64xf32, #tpu.memory_space<vmem>>, vector<1x8x64xf32>
    %1 = vector.shape_cast %0 : vector<1x8x64xf32> to vector<8x64xf32>
    %c0_2 = arith.constant 0 : index
    %c0_3 = arith.constant 0 : index
    %2 = vector.load %arg3[%c0_2, %c0_3] : memref<64x128xf32, #tpu.memory_space<vmem>>, vector<64x128xf32>
    %cst = arith.constant dense<0.000000e+00> : vector<8x128xf32>
    %3 = tpu.matmul %1, %2, %cst {dimension_numbers = #tpu.dot_dimension_numbers<[1], [0], [0], [1], [0, 0, 1, 1], [], []>} : vector<8x64xf32>, vector<64x128xf32>, vector<8x128xf32> -> vector<8x128xf32>
    %c0_4 = arith.constant 0 : index
    %c0_5 = arith.constant 0 : index
    %4 = vector.load %arg4[%c0_4, %c0_5] : memref<1x128xf32, #tpu.memory_space<vmem>>, vector<1x128xf32>
    %5 = vector.broadcast %4 : vector<1x128xf32> to vector<8x128xf32>
    %6 = arith.addf %3, %5 : vector<8x128xf32>
    %c0_6 = arith.constant 0 : index
    %c0_7 = arith.constant 0 : index
    %c0_8 = arith.constant 0 : index
    %7 = vector.load %arg2[%c0_6, %c0_7, %c0_8] : memref<1x8x128xf32, #tpu.memory_space<vmem>>, vector<1x8x128xf32>
    %8 = vector.shape_cast %7 : vector<1x8x128xf32> to vector<8x128xf32>
    %9 = tpu.concatenate %8, %6 in 1 : vector<8x128xf32>, vector<8x128xf32> -> vector<8x256xf32>
    %cst_9 = arith.constant 0.000000e+00 : f32
    %10 = vector.broadcast %cst_9 : f32 to vector<1x256xf32>
    %11 = tpu.concatenate %10, %9, %10 in 0 : vector<1x256xf32>, vector<8x256xf32>, vector<1x256xf32> -> vector<10x256xf32>
    %cst_10 = arith.constant 0.000000e+00 : f32
    %12 = vector.broadcast %cst_10 : f32 to vector<8x128xf32>
    %13 = vector.extract_strided_slice %11 {offsets = [0, 0], sizes = [8, 256], strides = [1, 1]} : vector<10x256xf32> to vector<8x256xf32>
    %c0_11 = arith.constant 0 : index
    %c0_12 = arith.constant 0 : index
    %c0_13 = arith.constant 0 : index
    %14 = vector.load %arg5[%c0_11, %c0_12, %c0_13] : memref<3x256x128xf32, #tpu.memory_space<vmem>>, vector<1x256x128xf32>
    %15 = vector.shape_cast %14 : vector<1x256x128xf32> to vector<256x128xf32>
    %cst_14 = arith.constant dense<0.000000e+00> : vector<8x128xf32>
    %16 = tpu.matmul %13, %15, %cst_14 {dimension_numbers = #tpu.dot_dimension_numbers<[1], [0], [0], [1], [0, 0, 1, 1], [], []>} : vector<8x256xf32>, vector<256x128xf32>, vector<8x128xf32> -> vector<8x128xf32>
    %17 = arith.addf %12, %16 : vector<8x128xf32>
    %18 = vector.extract_strided_slice %11 {offsets = [1, 0], sizes = [8, 256], strides = [1, 1]} : vector<10x256xf32> to vector<8x256xf32>
    %c1 = arith.constant 1 : index
    %c0_15 = arith.constant 0 : index
    %c0_16 = arith.constant 0 : index
    %19 = vector.load %arg5[%c1, %c0_15, %c0_16] : memref<3x256x128xf32, #tpu.memory_space<vmem>>, vector<1x256x128xf32>
    %20 = vector.shape_cast %19 : vector<1x256x128xf32> to vector<256x128xf32>
    %cst_17 = arith.constant dense<0.000000e+00> : vector<8x128xf32>
    %21 = tpu.matmul %18, %20, %cst_17 {dimension_numbers = #tpu.dot_dimension_numbers<[1], [0], [0], [1], [0, 0, 1, 1], [], []>} : vector<8x256xf32>, vector<256x128xf32>, vector<8x128xf32> -> vector<8x128xf32>
    %22 = arith.addf %17, %21 : vector<8x128xf32>
    %23 = vector.extract_strided_slice %11 {offsets = [2, 0], sizes = [8, 256], strides = [1, 1]} : vector<10x256xf32> to vector<8x256xf32>
    %c2 = arith.constant 2 : index
    %c0_18 = arith.constant 0 : index
    %c0_19 = arith.constant 0 : index
    %24 = vector.load %arg5[%c2, %c0_18, %c0_19] : memref<3x256x128xf32, #tpu.memory_space<vmem>>, vector<1x256x128xf32>
    %25 = vector.shape_cast %24 : vector<1x256x128xf32> to vector<256x128xf32>
    %cst_20 = arith.constant dense<0.000000e+00> : vector<8x128xf32>
    %26 = tpu.matmul %23, %25, %cst_20 {dimension_numbers = #tpu.dot_dimension_numbers<[1], [0], [0], [1], [0, 0, 1, 1], [], []>} : vector<8x256xf32>, vector<256x128xf32>, vector<8x128xf32> -> vector<8x128xf32>
    %27 = arith.addf %22, %26 : vector<8x128xf32>
    %c0_21 = arith.constant 0 : index
    %c0_22 = arith.constant 0 : index
    %28 = vector.load %arg6[%c0_21, %c0_22] : memref<1x128xf32, #tpu.memory_space<vmem>>, vector<1x128xf32>
    %29 = vector.broadcast %28 : vector<1x128xf32> to vector<8x128xf32>
    %30 = arith.addf %27, %29 : vector<8x128xf32>
    %c0_23 = arith.constant 0 : index
    %c0_24 = arith.constant 0 : index
    %c0_25 = arith.constant 0 : index
    %31 = vector.load %arg7[%c0_23, %c0_24, %c0_25] : memref<1x8x128xf32, #tpu.memory_space<vmem>>, vector<1x8x128xf32>
    %32 = vector.shape_cast %31 : vector<1x8x128xf32> to vector<8x128xf32>
    %33 = vector.shape_cast %30 : vector<8x128xf32> to vector<1x8x128xf32>
    tpu.vector_store %arg7[%c0_23, %c0_24, %c0_25], %33 {strides = array<i32>} : memref<1x8x128xf32, #tpu.memory_space<vmem>>, vector<1x8x128xf32>,
    %cst_26 = arith.constant dense<0.000000e+00> : vector<128xf32>
    %34 = vector.multi_reduction <add>, %30, %cst_26 [0] : vector<8x128xf32> to vector<128xf32>
    %35 = vector.shape_cast %34 : vector<128xf32> to vector<1x128xf32>
    %c0_27 = arith.constant 0 : index
    %c0_28 = arith.constant 0 : index
    %c0_29 = arith.constant 0 : index
    %36 = vector.load %arg8[%c0_27, %c0_28, %c0_29] : memref<1x1x128xf32, #tpu.memory_space<vmem>>, vector<1x1x128xf32>
    %37 = vector.shape_cast %36 : vector<1x1x128xf32> to vector<1x128xf32>
    %38 = vector.shape_cast %35 : vector<1x128xf32> to vector<1x1x128xf32>
    tpu.vector_store %arg8[%c0_27, %c0_28, %c0_29], %38 {strides = array<i32>} : memref<1x1x128xf32, #tpu.memory_space<vmem>>, vector<1x1x128xf32>,
    %39 = arith.mulf %30, %30 : vector<8x128xf32>
    %cst_30 = arith.constant dense<0.000000e+00> : vector<128xf32>
    %40 = vector.multi_reduction <add>, %39, %cst_30 [0] : vector<8x128xf32> to vector<128xf32>
    %41 = vector.shape_cast %40 : vector<128xf32> to vector<1x128xf32>
    %c0_31 = arith.constant 0 : index
    %c0_32 = arith.constant 0 : index
    %c0_33 = arith.constant 0 : index
    %42 = vector.load %arg9[%c0_31, %c0_32, %c0_33] : memref<1x1x128xf32, #tpu.memory_space<vmem>>, vector<1x1x128xf32>
    %43 = vector.shape_cast %42 : vector<1x1x128xf32> to vector<1x128xf32>
    %44 = vector.shape_cast %41 : vector<1x128xf32> to vector<1x1x128xf32>
    tpu.vector_store %arg9[%c0_31, %c0_32, %c0_33], %44 {strides = array<i32>} : memref<1x1x128xf32, #tpu.memory_space<vmem>>, vector<1x1x128xf32>,
    return
  }
  func.func @transform_0(%arg0: i32) -> (i32, i32, i32) {
    %c0_i32 = arith.constant 0 : i32
    %c0_i32_0 = arith.constant 0 : i32
    %c0_i32_1 = arith.constant 0 : i32
    return %arg0, %c0_i32, %c0_i32_0 : i32, i32, i32
  }
  func.func @transform_1(%arg0: i32) -> (i32, i32, i32) {
    %c0_i32 = arith.constant 0 : i32
    %c0_i32_0 = arith.constant 0 : i32
    %c0_i32_1 = arith.constant 0 : i32
    return %arg0, %c0_i32, %c0_i32_0 : i32, i32, i32
  }
  func.func @transform_2(%arg0: i32) -> (i32, i32) {
    %c0_i32 = arith.constant 0 : i32
    %c0_i32_0 = arith.constant 0 : i32
    %c0_i32_1 = arith.constant 0 : i32
    return %c0_i32, %c0_i32_0 : i32, i32
  }
  func.func @transform_3(%arg0: i32) -> (i32, i32) {
    %c0_i32 = arith.constant 0 : i32
    %c0_i32_0 = arith.constant 0 : i32
    %c0_i32_1 = arith.constant 0 : i32
    return %c0_i32, %c0_i32_0 : i32, i32
  }
  func.func @transform_4(%arg0: i32) -> (i32, i32, i32) {
    %c0_i32 = arith.constant 0 : i32
    %c0_i32_0 = arith.constant 0 : i32
    %c0_i32_1 = arith.constant 0 : i32
    %c0_i32_2 = arith.constant 0 : i32
    return %c0_i32, %c0_i32_0, %c0_i32_1 : i32, i32, i32
  }
  func.func @transform_5(%arg0: i32) -> (i32, i32) {
    %c0_i32 = arith.constant 0 : i32
    %c0_i32_0 = arith.constant 0 : i32
    %c0_i32_1 = arith.constant 0 : i32
    return %c0_i32, %c0_i32_0 : i32, i32
  }
  func.func @transform_6(%arg0: i32) -> (i32, i32, i32) {
    %c0_i32 = arith.constant 0 : i32
    %c0_i32_0 = arith.constant 0 : i32
    %c0_i32_1 = arith.constant 0 : i32
    return %arg0, %c0_i32, %c0_i32_0 : i32, i32, i32
  }
  func.func @transform_7(%arg0: i32) -> (i32, i32, i32) {
    %c0_i32 = arith.constant 0 : i32
    %c0_i32_0 = arith.constant 0 : i32
    %c0_i32_1 = arith.constant 0 : i32
    return %arg0, %c0_i32, %c0_i32_0 : i32, i32, i32
  }
  func.func @transform_8(%arg0: i32) -> (i32, i32, i32) {
    %c0_i32 = arith.constant 0 : i32
    %c0_i32_0 = arith.constant 0 : i32
    %c0_i32_1 = arith.constant 0 : i32
    return %arg0, %c0_i32, %c0_i32_0 : i32, i32, i32
  }
}

module attributes {stable_mosaic.version = 11 : i64} {
  func.func @bn1_conv2_kernel(%arg0: i32, %arg1: memref<1x8x128xf32, #tpu.memory_space<vmem>>, %arg2: memref<1x128xf32, #tpu.memory_space<vmem>>, %arg3: memref<1x128xf32, #tpu.memory_space<vmem>>, %arg4: memref<3x128x128xf32, #tpu.memory_space<vmem>>, %arg5: memref<1x128xf32, #tpu.memory_space<vmem>>, %arg6: memref<1x8x128xf32, #tpu.memory_space<vmem>>, %arg7: memref<1x1x128xf32, #tpu.memory_space<vmem>>, %arg8: memref<1x1x128xf32, #tpu.memory_space<vmem>>) attributes {dimension_semantics = [#tpu.dimension_semantics<parallel>], iteration_bounds = array<i64: 2>, scalar_prefetch = 0 : i64, scratch_operands = 0 : i64, tpu.core_type = #tpu.core_type<tc>, window_params = [{transform_indices = @transform_0, window_bounds = array<i64: 1, 8, 128>}, {pipeline_mode = #tpu.pipeline_mode<synchronous>, transform_indices = @transform_1, window_bounds = array<i64: 1, 128>}, {pipeline_mode = #tpu.pipeline_mode<synchronous>, transform_indices = @transform_2, window_bounds = array<i64: 1, 128>}, {pipeline_mode = #tpu.pipeline_mode<synchronous>, transform_indices = @transform_3, window_bounds = array<i64: 3, 128, 128>}, {pipeline_mode = #tpu.pipeline_mode<synchronous>, transform_indices = @transform_4, window_bounds = array<i64: 1, 128>}, {transform_indices = @transform_5, window_bounds = array<i64: 1, 8, 128>}, {transform_indices = @transform_6, window_bounds = array<i64: 1, 1, 128>}, {transform_indices = @transform_7, window_bounds = array<i64: 1, 1, 128>}]} {
    %c0 = arith.constant 0 : index
    %c0_0 = arith.constant 0 : index
    %c0_1 = arith.constant 0 : index
    %0 = vector.load %arg1[%c0, %c0_0, %c0_1] : memref<1x8x128xf32, #tpu.memory_space<vmem>>, vector<1x8x128xf32>
    %1 = vector.shape_cast %0 : vector<1x8x128xf32> to vector<8x128xf32>
    %c0_2 = arith.constant 0 : index
    %c0_3 = arith.constant 0 : index
    %2 = vector.load %arg2[%c0_2, %c0_3] : memref<1x128xf32, #tpu.memory_space<vmem>>, vector<1x128xf32>
    %3 = vector.broadcast %2 : vector<1x128xf32> to vector<8x128xf32>
    %4 = arith.mulf %1, %3 : vector<8x128xf32>
    %c0_4 = arith.constant 0 : index
    %c0_5 = arith.constant 0 : index
    %5 = vector.load %arg3[%c0_4, %c0_5] : memref<1x128xf32, #tpu.memory_space<vmem>>, vector<1x128xf32>
    %6 = vector.broadcast %5 : vector<1x128xf32> to vector<8x128xf32>
    %7 = arith.addf %4, %6 : vector<8x128xf32>
    %cst = arith.constant 0.000000e+00 : f32
    %8 = vector.broadcast %cst : f32 to vector<8x128xf32>
    %9 = arith.maximumf %7, %8 : vector<8x128xf32>
    %cst_6 = arith.constant 0.000000e+00 : f32
    %10 = vector.broadcast %cst_6 : f32 to vector<1x128xf32>
    %11 = tpu.concatenate %10, %9, %10 in 0 : vector<1x128xf32>, vector<8x128xf32>, vector<1x128xf32> -> vector<10x128xf32>
    %cst_7 = arith.constant 0.000000e+00 : f32
    %12 = vector.broadcast %cst_7 : f32 to vector<8x128xf32>
    %13 = vector.extract_strided_slice %11 {offsets = [0, 0], sizes = [8, 128], strides = [1, 1]} : vector<10x128xf32> to vector<8x128xf32>
    %c0_8 = arith.constant 0 : index
    %c0_9 = arith.constant 0 : index
    %c0_10 = arith.constant 0 : index
    %14 = vector.load %arg4[%c0_8, %c0_9, %c0_10] : memref<3x128x128xf32, #tpu.memory_space<vmem>>, vector<1x128x128xf32>
    %15 = vector.shape_cast %14 : vector<1x128x128xf32> to vector<128x128xf32>
    %cst_11 = arith.constant dense<0.000000e+00> : vector<8x128xf32>
    %16 = tpu.matmul %13, %15, %cst_11 {dimension_numbers = #tpu.dot_dimension_numbers<[1], [0], [0], [1], [0, 0, 1, 1], [], []>} : vector<8x128xf32>, vector<128x128xf32>, vector<8x128xf32> -> vector<8x128xf32>
    %17 = arith.addf %12, %16 : vector<8x128xf32>
    %18 = vector.extract_strided_slice %11 {offsets = [1, 0], sizes = [8, 128], strides = [1, 1]} : vector<10x128xf32> to vector<8x128xf32>
    %c1 = arith.constant 1 : index
    %c0_12 = arith.constant 0 : index
    %c0_13 = arith.constant 0 : index
    %19 = vector.load %arg4[%c1, %c0_12, %c0_13] : memref<3x128x128xf32, #tpu.memory_space<vmem>>, vector<1x128x128xf32>
    %20 = vector.shape_cast %19 : vector<1x128x128xf32> to vector<128x128xf32>
    %cst_14 = arith.constant dense<0.000000e+00> : vector<8x128xf32>
    %21 = tpu.matmul %18, %20, %cst_14 {dimension_numbers = #tpu.dot_dimension_numbers<[1], [0], [0], [1], [0, 0, 1, 1], [], []>} : vector<8x128xf32>, vector<128x128xf32>, vector<8x128xf32> -> vector<8x128xf32>
    %22 = arith.addf %17, %21 : vector<8x128xf32>
    %23 = vector.extract_strided_slice %11 {offsets = [2, 0], sizes = [8, 128], strides = [1, 1]} : vector<10x128xf32> to vector<8x128xf32>
    %c2 = arith.constant 2 : index
    %c0_15 = arith.constant 0 : index
    %c0_16 = arith.constant 0 : index
    %24 = vector.load %arg4[%c2, %c0_15, %c0_16] : memref<3x128x128xf32, #tpu.memory_space<vmem>>, vector<1x128x128xf32>
    %25 = vector.shape_cast %24 : vector<1x128x128xf32> to vector<128x128xf32>
    %cst_17 = arith.constant dense<0.000000e+00> : vector<8x128xf32>
    %26 = tpu.matmul %23, %25, %cst_17 {dimension_numbers = #tpu.dot_dimension_numbers<[1], [0], [0], [1], [0, 0, 1, 1], [], []>} : vector<8x128xf32>, vector<128x128xf32>, vector<8x128xf32> -> vector<8x128xf32>
    %27 = arith.addf %22, %26 : vector<8x128xf32>
    %c0_18 = arith.constant 0 : index
    %c0_19 = arith.constant 0 : index
    %28 = vector.load %arg5[%c0_18, %c0_19] : memref<1x128xf32, #tpu.memory_space<vmem>>, vector<1x128xf32>
    %29 = vector.broadcast %28 : vector<1x128xf32> to vector<8x128xf32>
    %30 = arith.addf %27, %29 : vector<8x128xf32>
    %c0_20 = arith.constant 0 : index
    %c0_21 = arith.constant 0 : index
    %c0_22 = arith.constant 0 : index
    %31 = vector.load %arg6[%c0_20, %c0_21, %c0_22] : memref<1x8x128xf32, #tpu.memory_space<vmem>>, vector<1x8x128xf32>
    %32 = vector.shape_cast %31 : vector<1x8x128xf32> to vector<8x128xf32>
    %33 = vector.shape_cast %30 : vector<8x128xf32> to vector<1x8x128xf32>
    tpu.vector_store %arg6[%c0_20, %c0_21, %c0_22], %33 {strides = array<i32>} : memref<1x8x128xf32, #tpu.memory_space<vmem>>, vector<1x8x128xf32>,
    %cst_23 = arith.constant dense<0.000000e+00> : vector<128xf32>
    %34 = vector.multi_reduction <add>, %30, %cst_23 [0] : vector<8x128xf32> to vector<128xf32>
    %35 = vector.shape_cast %34 : vector<128xf32> to vector<1x128xf32>
    %c0_24 = arith.constant 0 : index
    %c0_25 = arith.constant 0 : index
    %c0_26 = arith.constant 0 : index
    %36 = vector.load %arg7[%c0_24, %c0_25, %c0_26] : memref<1x1x128xf32, #tpu.memory_space<vmem>>, vector<1x1x128xf32>
    %37 = vector.shape_cast %36 : vector<1x1x128xf32> to vector<1x128xf32>
    %38 = vector.shape_cast %35 : vector<1x128xf32> to vector<1x1x128xf32>
    tpu.vector_store %arg7[%c0_24, %c0_25, %c0_26], %38 {strides = array<i32>} : memref<1x1x128xf32, #tpu.memory_space<vmem>>, vector<1x1x128xf32>,
    %39 = arith.mulf %30, %30 : vector<8x128xf32>
    %cst_27 = arith.constant dense<0.000000e+00> : vector<128xf32>
    %40 = vector.multi_reduction <add>, %39, %cst_27 [0] : vector<8x128xf32> to vector<128xf32>
    %41 = vector.shape_cast %40 : vector<128xf32> to vector<1x128xf32>
    %c0_28 = arith.constant 0 : index
    %c0_29 = arith.constant 0 : index
    %c0_30 = arith.constant 0 : index
    %42 = vector.load %arg8[%c0_28, %c0_29, %c0_30] : memref<1x1x128xf32, #tpu.memory_space<vmem>>, vector<1x1x128xf32>
    %43 = vector.shape_cast %42 : vector<1x1x128xf32> to vector<1x128xf32>
    %44 = vector.shape_cast %41 : vector<1x128xf32> to vector<1x1x128xf32>
    tpu.vector_store %arg8[%c0_28, %c0_29, %c0_30], %44 {strides = array<i32>} : memref<1x1x128xf32, #tpu.memory_space<vmem>>, vector<1x1x128xf32>,
    return
  }
  func.func @transform_0(%arg0: i32) -> (i32, i32, i32) {
    %c0_i32 = arith.constant 0 : i32
    %c0_i32_0 = arith.constant 0 : i32
    %c0_i32_1 = arith.constant 0 : i32
    return %arg0, %c0_i32, %c0_i32_0 : i32, i32, i32
  }
  func.func @transform_1(%arg0: i32) -> (i32, i32) {
    %c0_i32 = arith.constant 0 : i32
    %c0_i32_0 = arith.constant 0 : i32
    %c0_i32_1 = arith.constant 0 : i32
    return %c0_i32, %c0_i32_0 : i32, i32
  }
  func.func @transform_2(%arg0: i32) -> (i32, i32) {
    %c0_i32 = arith.constant 0 : i32
    %c0_i32_0 = arith.constant 0 : i32
    %c0_i32_1 = arith.constant 0 : i32
    return %c0_i32, %c0_i32_0 : i32, i32
  }
  func.func @transform_3(%arg0: i32) -> (i32, i32, i32) {
    %c0_i32 = arith.constant 0 : i32
    %c0_i32_0 = arith.constant 0 : i32
    %c0_i32_1 = arith.constant 0 : i32
    %c0_i32_2 = arith.constant 0 : i32
    return %c0_i32, %c0_i32_0, %c0_i32_1 : i32, i32, i32
  }
  func.func @transform_4(%arg0: i32) -> (i32, i32) {
    %c0_i32 = arith.constant 0 : i32
    %c0_i32_0 = arith.constant 0 : i32
    %c0_i32_1 = arith.constant 0 : i32
    return %c0_i32, %c0_i32_0 : i32, i32
  }
  func.func @transform_5(%arg0: i32) -> (i32, i32, i32) {
    %c0_i32 = arith.constant 0 : i32
    %c0_i32_0 = arith.constant 0 : i32
    %c0_i32_1 = arith.constant 0 : i32
    return %arg0, %c0_i32, %c0_i32_0 : i32, i32, i32
  }
  func.func @transform_6(%arg0: i32) -> (i32, i32, i32) {
    %c0_i32 = arith.constant 0 : i32
    %c0_i32_0 = arith.constant 0 : i32
    %c0_i32_1 = arith.constant 0 : i32
    return %arg0, %c0_i32, %c0_i32_0 : i32, i32, i32
  }
  func.func @transform_7(%arg0: i32) -> (i32, i32, i32) {
    %c0_i32 = arith.constant 0 : i32
    %c0_i32_0 = arith.constant 0 : i32
    %c0_i32_1 = arith.constant 0 : i32
    return %arg0, %c0_i32, %c0_i32_0 : i32, i32, i32
  }
}

</mosaic_0001>

<bundles_post_ra>
// kernel: tile.18
= control target key start
LH: loop header
LB: loop body
LE: loop exit
PB: predicated region body
PF: predicated region fallthrough
CT: control target
= control target key end

     0   :  { %s40_s0 = inlined_call_operand.vmem [shape: f32[4], index: 0, kind: input, shape index: {}]   ;;  %s41_s1 = inlined_call_operand.vmem [shape: f32[32,4], index: 1, kind: output, shape index: {}]  }
   0x1   :  { %v4_v0 = vld [vmem:[%s40_s0] ss:$0 sm:$0xff] }
   0x2   :  { %5 = vst [vmem:[%s41_s1] sm:$0xff] %v4_v0 }
   0x3   :  { %12 = vst [vmem:[%s41_s1 + $0x8] sm:$0xff] %v4_v0 }
   0x4   :  { %13 = vst [vmem:[%s41_s1 + $0x10] sm:$0xff] %v4_v0 }
   0x5   :  { %14 = vst [vmem:[%s41_s1 + $0x18] sm:$0xff] %v4_v0 }

// kernel: tile.19
= control target key start
LH: loop header
LB: loop body
LE: loop exit
PB: predicated region body
PF: predicated region fallthrough
CT: control target
= control target key end

     0   :  { %s259_s10 = smov 124   ;;  %s260_s11 = smov 116   ;;  %vm3_vm0 = vcmask 31744   ;;  %vm9_vm1 = vcmask 1048544   ;;  %vm15_vm2 = vcmask 1015744   ;;  %vm21_vm3 = vcmask 982944   ;;  %s399_s0 = inlined_call_operand.vmem [shape: f32[32,4], index: 0, kind: input, shape index: {}]   ;;  %s400_s1 = inlined_call_operand.vmem [shape: f32[1,128], index: 1, kind: output, shape index: {}]  }
   0x1   :  { %v197_v0 = vld [vmem:[%s399_s0 + $0x1f] sm:$0x1]   ;;  %v199_v1 = vld [vmem:[%s399_s0 + $0x1d] sm:$0x1]   ;;  %v201_v2 = vld [vmem:[%s399_s0 + $0x1b] sm:$0x1]  }
   0x2   :  { %7 = vrot.lane.b32.xlu0 %v197_v0, %s259_s10  ;;  %19 = vrot.lane.b32.xlu1 %v199_v1, %s260_s11  ;;  %s261_s14 = smov 108   ;;  %v198_v3 = vld [vmem:[%s399_s0 + $0x1e] sm:$0x1]   ;;  %v200_v4 = vld [vmem:[%s399_s0 + $0x1c] sm:$0x1]   ;;  %s262_s19 = smov 120  }
   0x3   :  { %31 = vrot.lane.b32.xlu2 %v201_v2, %s261_s14  ;;  %s263_s20 = smov 112   ;;  %v202_v5 = vld [vmem:[%s399_s0 + $0x1a] sm:$0x1]   ;;  %s264_s23 = smov 104   ;;  %v203_v6 = vld [vmem:[%s399_s0 + $0x19] sm:$0x1]  }
   0x4   :  { %v204_v7 = vld [vmem:[%s399_s0 + $0x18] sm:$0x1]   ;;  %s265_s28 = smov 100   ;;  %s266_s29 = smov 96   ;;  %v205_v8 = vld [vmem:[%s399_s0 + $0x17] sm:$0x1]  }
   0x5   :  { %s267_s3 = smov 92   ;;  %v206_v9 = vld [vmem:[%s399_s0 + $0x16] sm:$0x1]   ;;  %v207_v10 = vld [vmem:[%s399_s0 + $0x15] sm:$0x1]   ;;  %s268_s8 = smov 88  }
   0x6   :  { %s269_s9 = smov 84   ;;  %v208_v11 = vld [vmem:[%s399_s0 + $0x14] sm:$0x1]   ;;  %s270_s12 = smov 80   ;;  %v209_v12 = vld [vmem:[%s399_s0 + $0x13] sm:$0x1]  }
   0x7   :  { %v210_v13 = vld [vmem:[%s399_s0 + $0x12] sm:$0x1]   ;;  %s271_s17 = smov 76   ;;  %s272_s18 = smov 72   ;;  %v211_v14 = vld [vmem:[%s399_s0 + $0x11] sm:$0x1]  }
   0x8   :  { %s273_s21 = smov 68   ;;  %v212_v15 = vld [vmem:[%s399_s0 + $0x10] sm:$0x1]   ;;  %v213_v16 = vld [vmem:[%s399_s0 + $0xf] sm:$0x1]   ;;  %s274_s26 = smov 64  }
   0x9   :  { %s275_s27 = smov 60   ;;  %v214_v17 = vld [vmem:[%s399_s0 + $0xe] sm:$0x1]   ;;  %s276_s30 = smov 56   ;;  %v215_v18 = vld [vmem:[%s399_s0 + $0xd] sm:$0x1]  }
   0xa   :  { %13 = vrot.lane.b32.xlu0 %v198_v3, %s262_s19  ;;  %25 = vrot.lane.b32.xlu1 %v200_v4, %s263_s20  ;;  %v216_v19 = vld [vmem:[%s399_s0 + $0xc] sm:$0x1]   ;;  %s277_s6 = smov 52   ;;  %s278_s7 = smov 48   ;;  %v217_v20 = vld [vmem:[%s399_s0 + $0xb] sm:$0x1]  }
   0xb   :  { %37 = vrot.lane.b32.xlu2 %v202_v5, %s264_s23  ;;  %s279_s10 = smov 44   ;;  %v218_v21 = vld [vmem:[%s399_s0 + $0xa] sm:$0x1]   ;;  %v219_v22 = vld [vmem:[%s399_s0 + $0x9] sm:$0x1]   ;;  %s280_s15 = smov 40  }
   0xc   :  { %s281_s16 = smov 36   ;;  %v220_v23 = vld [vmem:[%s399_s0 + $0x8] sm:$0x1]   ;;  %s282_s19 = smov 32   ;;  %v221_v24 = vld [vmem:[%s399_s0 + $0x7] sm:$0x1]  }
   0xd   :  { %v222_v25 = vld [vmem:[%s399_s0 + $0x6] sm:$0x1]   ;;  %s283_s24 = smov 28   ;;  %s284_s25 = smov 24   ;;  %v223_v26 = vld [vmem:[%s399_s0 + $0x5] sm:$0x1]  }
   0xe   :  { %v224_v27 = vld [vmem:[%s399_s0 + $0x4] sm:$0x1]   ;;  %v225_v28 = vld [vmem:[%s399_s0 + $0x3] sm:$0x1]   ;;  %s286_s4 = smov 16   ;;  %s287_s5 = smov 12  }
   0xf   :  { %v226_v29 = vld [vmem:[%s399_s0 + $0x2] sm:$0x1]   ;;  %v227_v30 = vld [vmem:[%s399_s0 + $0x1] sm:$0x1]   ;;  %s289_s11 = smov 4   ;;  %vm27_vm4 = vcmask 950144  }
  0x10   :  { %v2_v31 = vld [vmem:[%s399_s0] sm:$0x1]   ;;  %vm33_vm5 = vcmask 917344   ;;  %vm39_vm6 = vcmask 884544   ;;  %vm45_vm7 = vcmask 851744   ;;  %vm51_vm8 = vcmask 818944  }
  0x11   :  { %4 = vst.msk [vmem:[#allocation0] sm:$0x1] %vm3_vm0, %v2_v31   ;;  %vm57_vm9 = vcmask 786144   ;;  %vm63_vm10 = vcmask 753344   ;;  %vm69_vm11 = vcmask 720544   ;;  %vm75_vm12 = vcmask 687744  }
  0x12   :  { %43 = vrot.lane.b32.xlu0 %v203_v6, %s265_s28  ;;  %49 = vrot.lane.b32.xlu1 %v204_v7, %s266_s29  ;;  %s285_s28 = smov 20   ;;  %vm81_vm13 = vcmask 654944   ;;  %vm87_vm14 = vcmask 622144   ;;  %vm93_vm15 = vcmask 589344   ;;  %vm99_vm0 = vcmask 556544  }
  0x13   :  { %55 = vrot.lane.b32.xlu2 %v205_v8, %s267_s3 }
  0x1a   :  { %61 = vrot.lane.b32.xlu0 %v206_v9, %s268_s8  ;;  %67 = vrot.lane.b32.xlu1 %v207_v10, %s269_s9  ;;  %s288_s8 = smov 8  }
  0x1b   :  { %73 = vrot.lane.b32.xlu2 %v208_v11, %s270_s12 }
  0x22   :  { %79 = vrot.lane.b32.xlu0 %v209_v12, %s271_s17  ;;  %85 = vrot.lane.b32.xlu1 %v210_v13, %s272_s18 }
  0x23   :  { %91 = vrot.lane.b32.xlu2 %v211_v14, %s273_s21 }
  0x2a   :  { %97 = vrot.lane.b32.xlu0 %v212_v15, %s274_s26  ;;  %103 = vrot.lane.b32.xlu1 %v213_v16, %s275_s27 }
  0x2b   :  { %109 = vrot.lane.b32.xlu2 %v214_v17, %s276_s30 }
  0x32   :  { %115 = vrot.lane.b32.xlu0 %v215_v18, %s277_s6  ;;  %121 = vrot.lane.b32.xlu1 %v216_v19, %s278_s7 }
  0x33   :  { %127 = vrot.lane.b32.xlu2 %v217_v20, %s279_s10 }
  0x3a   :  { %133 = vrot.lane.b32.xlu0 %v218_v21, %s280_s15  ;;  %139 = vrot.lane.b32.xlu1 %v219_v22, %s281_s16 }
  0x3b   :  { %145 = vrot.lane.b32.xlu2 %v220_v23, %s282_s19 }
  0x42   :  { %151 = vrot.lane.b32.xlu0 %v221_v24, %s283_s24  ;;  %157 = vrot.lane.b32.xlu1 %v222_v25, %s284_s25 }
  0x43   :  { %163 = vrot.lane.b32.xlu2 %v223_v26, %s285_s28 }
  0x4a   :  { %169 = vrot.lane.b32.xlu0 %v224_v27, %s286_s4  ;;  %175 = vrot.lane.b32.xlu1 %v225_v28, %s287_s5 }
  0x4b   :  { %181 = vrot.lane.b32.xlu2 %v226_v29, %s288_s8 }
  0x52   :  { %187 = vrot.lane.b32.xlu0 %v227_v30, %s289_s11 }
  0x5d   :  { %v32_v32 = vpop.permute.xlu2 %31  }
  0x65   :  { %v38_v33 = vpop.permute.xlu2 %37  }
  0x6d   :  { %v56_v34 = vpop.permute.xlu2 %55  }
  0x74   :  { %v8_v35 = vpop.permute.xlu0 %7   ;;  %v20_v36 = vpop.permute.xlu1 %19  }
  0x75   :  { %10 = vst.msk [vmem:[#allocation0] sm:$0x1] %vm9_vm1, %v8_v35   ;;  %v74_v37 = vpop.permute.xlu2 %73   ;;  %vm105_vm1 = vcmask 523744  }
  0x7c   :  { %v14_v38 = vpop.permute.xlu0 %13   ;;  %v26_v39 = vpop.permute.xlu1 %25  }
  0x7d   :  { %16 = vst.msk [vmem:[#allocation0] sm:$0x1] %vm15_vm2, %v14_v38   ;;  %v92_v40 = vpop.permute.xlu2 %91   ;;  %vm111_vm2 = vcmask 490944  }
  0x7e   :  { %22 = vst.msk [vmem:[#allocation0] sm:$0x1] %vm21_vm3, %v20_v36   ;;  %vm117_vm3 = vcmask 458144  }
  0x7f   :  { %28 = vst.msk [vmem:[#allocation0] sm:$0x1] %vm27_vm4, %v26_v39   ;;  %vm123_vm4 = vcmask 425344  }
  0x80   :  { %34 = vst.msk [vmem:[#allocation0] sm:$0x1] %vm33_vm5, %v32_v32   ;;  %vm129_vm5 = vcmask 392544  }
  0x81   :  { %40 = vst.msk [vmem:[#allocation0] sm:$0x1] %vm39_vm6, %v38_v33   ;;  %vm135_vm6 = vcmask 359744  }
  0x84   :  { %v44_v41 = vpop.permute.xlu0 %43   ;;  %v50_v42 = vpop.permute.xlu1 %49  }
  0x85   :  { %46 = vst.msk [vmem:[#allocation0] sm:$0x1] %vm45_vm7, %v44_v41   ;;  %v110_v43 = vpop.permute.xlu2 %109   ;;  %vm141_vm7 = vcmask 326944  }
  0x86   :  { %52 = vst.msk [vmem:[#allocation0] sm:$0x1] %vm51_vm8, %v50_v42   ;;  %vm147_vm8 = vcmask 294144  }
  0x87   :  { %58 = vst.msk [vmem:[#allocation0] sm:$0x1] %vm57_vm9, %v56_v34   ;;  %vm153_vm9 = vcmask 261344  }
  0x8c   :  { %v62_v44 = vpop.permute.xlu0 %61   ;;  %v68_v45 = vpop.permute.xlu1 %67  }
  0x8d   :  { %64 = vst.msk [vmem:[#allocation0] sm:$0x1] %vm63_vm10, %v62_v44   ;;  %v128_v46 = vpop.permute.xlu2 %127   ;;  %vm159_vm10 = vcmask 228544  }
  0x8e   :  { %70 = vst.msk [vmem:[#allocation0] sm:$0x1] %vm69_vm11, %v68_v45   ;;  %vm165_vm11 = vcmask 195744  }
  0x8f   :  { %76 = vst.msk [vmem:[#allocation0] sm:$0x1] %vm75_vm12, %v74_v37   ;;  %vm171_vm12 = vcmask 162944  }
  0x94   :  { %v80_v47 = vpop.permute.xlu0 %79   ;;  %v86_v48 = vpop.permute.xlu1 %85  }
  0x95   :  { %82 = vst.msk [vmem:[#allocation0] sm:$0x1] %vm81_vm13, %v80_v47   ;;  %v146_v49 = vpop.permute.xlu2 %145   ;;  %vm177_vm13 = vcmask 130144  }
  0x96   :  { %88 = vst.msk [vmem:[#allocation0] sm:$0x1] %vm87_vm14, %v86_v48   ;;  %vm183_vm14 = vcmask 97344  }
  0x97   :  { %94 = vst.msk [vmem:[#allocation0] sm:$0x1] %vm93_vm15, %v92_v40   ;;  %vm189_vm15 = vcmask 64544  }
  0x9c   :  { %v98_v50 = vpop.permute.xlu0 %97   ;;  %v104_v51 = vpop.permute.xlu1 %103  }
  0x9d   :  { %100 = vst.msk [vmem:[#allocation0] sm:$0x1] %vm99_vm0, %v98_v50   ;;  %v164_v52 = vpop.permute.xlu2 %163  }
  0x9e   :  { %106 = vst.msk [vmem:[#allocation0] sm:$0x1] %vm105_vm1, %v104_v51  }
  0x9f   :  { %112 = vst.msk [vmem:[#allocation0] sm:$0x1] %vm111_vm2, %v110_v43  }
  0xa4   :  { %v116_v53 = vpop.permute.xlu0 %115   ;;  %v122_v54 = vpop.permute.xlu1 %121  }
  0xa5   :  { %118 = vst.msk [vmem:[#allocation0] sm:$0x1] %vm117_vm3, %v116_v53   ;;  %v182_v55 = vpop.permute.xlu2 %181  }
  0xa6   :  { %124 = vst.msk [vmem:[#allocation0] sm:$0x1] %vm123_vm4, %v122_v54  }
  0xa7   :  { %130 = vst.msk [vmem:[#allocation0] sm:$0x1] %vm129_vm5, %v128_v46  }
  0xac   :  { %v134_v56 = vpop.permute.xlu0 %133   ;;  %v140_v57 = vpop.permute.xlu1 %139  }
  0xad   :  { %136 = vst.msk [vmem:[#allocation0] sm:$0x1] %vm135_vm6, %v134_v56  }
  0xae   :  { %142 = vst.msk [vmem:[#allocation0] sm:$0x1] %vm141_vm7, %v140_v57  }
  0xaf   :  { %148 = vst.msk [vmem:[#allocation0] sm:$0x1] %vm147_vm8, %v146_v49  }
  0xb4   :  { %v152_v58 = vpop.permute.xlu0 %151   ;;  %v158_v59 = vpop.permute.xlu1 %157  }
  0xb5   :  { %154 = vst.msk [vmem:[#allocation0] sm:$0x1] %vm153_vm9, %v152_v58  }
  0xb6   :  { %160 = vst.msk [vmem:[#allocation0] sm:$0x1] %vm159_vm10, %v158_v59  }
  0xb7   :  { %166 = vst.msk [vmem:[#allocation0] sm:$0x1] %vm165_vm11, %v164_v52  }
  0xbc   :  { %v170_v60 = vpop.permute.xlu0 %169   ;;  %v176_v61 = vpop.permute.xlu1 %175  }
  0xbd   :  { %172 = vst.msk [vmem:[#allocation0] sm:$0x1] %vm171_vm12, %v170_v60  }
  0xbe   :  { %178 = vst.msk [vmem:[#allocation0] sm:$0x1] %vm177_vm13, %v176_v61  }
  0xbf   :  { %184 = vst.msk [vmem:[#allocation0] sm:$0x1] %vm183_vm14, %v182_v55  }
  0xc4   :  { %v188_v62 = vpop.permute.xlu0 %187  }
  0xc5   :  { %190 = vst.msk [vmem:[#allocation0] sm:$0x1] %vm189_vm15, %v188_v62  }
  0xcc   :  { %v193_v63 = vld [vmem:[#allocation0] sm:$0x1] }
  0xcd   :  { %196 = vst [vmem:[%s400_s1] sm:$0x1] %v193_v63 }

// kernel: up_forward.2
= control target key start
LH: loop header
LB: loop body
LE: loop exit
PB: predicated region body
PF: predicated region fallthrough
CT: control target
= control target key end

     0   :  { %s903_s27 = smov 0   ;;  %s1274_s0 = inlined_call_operand.vmem [shape: f32[2,8,64], index: 0, kind: input, shape index: {}]   ;;  %s1275_s1 = inlined_call_operand.vmem [shape: f32[2,8,128], index: 1, kind: input, shape index: {}]   ;;  %s1276_s2 = inlined_call_operand.vmem [shape: f32[64,128], index: 2, kind: input, shape index: {}]   ;;  %s1277_s3 = inlined_call_operand.vmem [shape: f32[1,128], index: 3, kind: input, shape index: {}]   ;;  %s1278_s4 = inlined_call_operand.vmem [shape: f32[3,256,128], index: 4, kind: input, shape index: {}]   ;;  %s1279_s5 = inlined_call_operand.vmem [shape: f32[1,128], index: 5, kind: input, shape index: {}]   ;;  %s1280_s6 = inlined_call_operand.vmem [shape: f32[2,8,128], index: 6, kind: output, shape index: {0}]   ;;  %s1281_s7 = inlined_call_operand.vmem [shape: f32[2,1,128], index: 7, kind: output, shape index: {1}]   ;;  %s1282_s8 = inlined_call_operand.vmem [shape: f32[2,1,128], index: 8, kind: output, shape index: {2}]  }
   0x1 LB: > { %s761_s28 = sadd.s32 4294967295, %s856_s27   ;;  %p765_p0 = scmp.ge.s32.totalorder %s856_s27, 1  ;;  %s856_s27 = sphi %s903_s27, %s19_s27  }
   0x2   : > { %p275_p1 = scmp.lt.s32.totalorder %s856_s27, 3 }
   0x4   : > { %p276_p2 = pnand %p765_p0, %p275_p1 }
   0x5   : > { %p317_p3 = scmp.lt.s32.totalorder (!%p276_p2), %s761_s28, 1 }
   0x6   : > { %279 = sbr.rel (%p276_p2) target bundleno = 322 (0x142), region = 44 }
   0xb   : > { %v343_v0 = vld [vmem:[%s1276_s2 + $0x38] sm:$0xff]  ;;  %v342_v1 = vld [vmem:[%s1276_s2 + $0x30] sm:$0xff]  ;;  %v341_v2 = vld [vmem:[%s1276_s2 + $0x28] sm:$0xff]  ;;  %s1286_s28 = smov (!%p317_p3, %s761_s28), 1  ;;  %vm348_vm0 = vcmask 523264   ;;  %vm379_vm1 = vcmask 1040384  }
   0xc   : > { %360 = vmatpush.msra.mxu0 %v343_v0  ;;  %v801_v3 = vld [vmem:[%s1278_s4 + $0x1f8] sm:$0xff]  ;;  %v800_v4 = vld [vmem:[%s1278_s4 + $0x1f0] sm:$0xff]  ;;  %v340_v6 = vld [vmem:[%s1276_s2 + $0x20] sm:$0xff]  ;;  %s950_s11 = sshll.u32 %s1286_s28, 3  ;;  %vm453_vm3 = vcmask 1046528   ;;  %vm575_vm4 = vcmask 1045504   ;;  %s331_s21 = scalar_lea.vmem %s1281_s7, %s1286_s28 }
   0xd   : > { %482 = vmatpush.msra.mxu2 %v801_v3  ;;  %v785_v5 = vld [vmem:[%s1278_s4 + $0x178] sm:$0xff]  ;;  %v799_v7 = vld [vmem:[%s1278_s4 + $0x1e8] sm:$0xff]  ;;  %v784_v8 = vld [vmem:[%s1278_s4 + $0x170] sm:$0xff]  ;;  %s320_s24 = scalar_lea.vmem %s1274_s0, %s950_s11  ;;  %s324_s19 = scalar_lea.vmem %s1275_s1, %s950_s11 }
   0xe   : > { %361 = vmatpush.msra.mxu0 %v342_v1  ;;  %462 = vmatpush.msra.mxu1 %v785_v5  ;;  %v783_v9 = vld [vmem:[%s1278_s4 + $0x168] sm:$0xff]  ;;  %v339_v10 = vld [vmem:[%s1276_s2 + $0x18] sm:$0xff]  ;;  %v798_v11 = vld [vmem:[%s1278_s4 + $0x1e0] sm:$0xff]  ;;  %s328_s18 = scalar_lea.vmem %s1280_s6, %s950_s11  ;;  %s334_s23 = scalar_lea.vmem %s1282_s8, %s1286_s28 }
   0xf   : > { %483 = vmatpush.msra.mxu2 %v800_v4  ;;  %v782_v12 = vld [vmem:[%s1278_s4 + $0x160] sm:$0xff]  ;;  %v338_v13 = vld [vmem:[%s1276_s2 + $0x10] sm:$0xff]  ;;  %v797_v14 = vld [vmem:[%s1278_s4 + $0x1d8] sm:$0xff] }
  0x10   : > { %362 = vmatpush.msra.mxu0 %v341_v2  ;;  %463 = vmatpush.msra.mxu1 %v784_v8  ;;  %v781_v15 = vld [vmem:[%s1278_s4 + $0x158] sm:$0xff]  ;;  %v337_v16 = vld [vmem:[%s1276_s2 + $0x8] sm:$0xff]  ;;  %v796_v17 = vld [vmem:[%s1278_s4 + $0x1d0] sm:$0xff] }
  0x11   : > { %484 = vmatpush.msra.mxu2 %v799_v7  ;;  %v780_v18 = vld [vmem:[%s1278_s4 + $0x150] sm:$0xff]  ;;  %v399_v19 = vld [vmem:[%s1278_s4 + $0x78] sm:$0xff]  ;;  %v336_v20 = vld [vmem:[%s1276_s2] sm:$0xff] }
  0x12   : > { %363 = vmatpush.msra.mxu0 %v340_v6  ;;  %464 = vmatpush.msra.mxu1 %v783_v9  ;;  %v795_v21 = vld [vmem:[%s1278_s4 + $0x1c8] sm:$0xff]  ;;  %v335_v22 = vld [vmem:[%s320_s24] sm:$0xff]  ;;  %v398_v24 = vld [vmem:[%s1278_s4 + $0x70] sm:$0xff] }
  0x13   : > { %485 = vmatpush.msra.mxu2 %v798_v11  ;;  %502 = vmatpush.msra.mxu3 %v399_v19  ;;  %v779_v23 = vld [vmem:[%s1278_s4 + $0x148] sm:$0xff]  ;;  %v794_v25 = vld [vmem:[%s1278_s4 + $0x1c0] sm:$0xff]  ;;  %v415_v26 = vld [vmem:[%s1278_s4 + $0xf8] sm:$0xff] }
  0x14   : > { %364 = vmatpush.msra.mxu0 %v339_v10  ;;  %465 = vmatpush.msra.mxu1 %v782_v12  ;;  %v778_v27 = vld [vmem:[%s1278_s4 + $0x140] sm:$0xff]  ;;  %v397_v28 = vld [vmem:[%s1278_s4 + $0x68] sm:$0xff]  ;;  %v793_v29 = vld [vmem:[%s1278_s4 + $0x1b8] sm:$0xff] }
  0x15   : > { %486 = vmatpush.msra.mxu2 %v797_v14  ;;  %503 = vmatpush.msra.mxu3 %v398_v24  ;;  %v414_v30 = vld [vmem:[%s1278_s4 + $0xf0] sm:$0xff]  ;;  %v777_v31 = vld [vmem:[%s1278_s4 + $0x138] sm:$0xff]  ;;  %v396_v32 = vld [vmem:[%s1278_s4 + $0x60] sm:$0xff] }
  0x16   : > { %365 = vmatpush.msra.mxu0 %v338_v13  ;;  %466 = vmatpush.msra.mxu1 %v781_v15  ;;  %v792_v33 = vld [vmem:[%s1278_s4 + $0x1b0] sm:$0xff]  ;;  %v413_v34 = vld [vmem:[%s1278_s4 + $0xe8] sm:$0xff]  ;;  %v395_v36 = vld [vmem:[%s1278_s4 + $0x58] sm:$0xff] }
  0x17   : > { %487 = vmatpush.msra.mxu2 %v796_v17  ;;  %504 = vmatpush.msra.mxu3 %v397_v28  ;;  %v776_v35 = vld [vmem:[%s1278_s4 + $0x130] sm:$0xff]  ;;  %v791_v37 = vld [vmem:[%s1278_s4 + $0x1a8] sm:$0xff]  ;;  %v412_v38 = vld [vmem:[%s1278_s4 + $0xe0] sm:$0xff] }
  0x18   : > { %366 = vmatpush.msra.mxu0 %v337_v16  ;;  %467 = vmatpush.msra.mxu1 %v780_v18  ;;  %v775_v39 = vld [vmem:[%s1278_s4 + $0x128] sm:$0xff]  ;;  %v394_v40 = vld [vmem:[%s1278_s4 + $0x50] sm:$0xff]  ;;  %v790_v41 = vld [vmem:[%s1278_s4 + $0x1a0] sm:$0xff] }
  0x19   : > { %488 = vmatpush.msra.mxu2 %v795_v21  ;;  %505 = vmatpush.msra.mxu3 %v396_v32  ;;  %v411_v42 = vld [vmem:[%s1278_s4 + $0xd8] sm:$0xff]  ;;  %v774_v43 = vld [vmem:[%s1278_s4 + $0x120] sm:$0xff]  ;;  %v393_v44 = vld [vmem:[%s1278_s4 + $0x48] sm:$0xff] }
  0x1a   : > { %367 = vmatpush.msra.mxu0 %v336_v20  ;;  %468 = vmatpush.msra.mxu1 %v779_v23  ;;  %v789_v45 = vld [vmem:[%s1278_s4 + $0x198] sm:$0xff]  ;;  %v410_v46 = vld [vmem:[%s1278_s4 + $0xd0] sm:$0xff]  ;;  %v392_v48 = vld [vmem:[%s1278_s4 + $0x40] sm:$0xff] }
  0x1b   : > { %769 = vmatmul.msk.f32.vlgmr.msra.gmra.mxu0 %vm348_vm0, %v335_v22  ;;  %489 = vmatpush.msra.mxu2 %v794_v25  ;;  %v773_v47 = vld [vmem:[%s1278_s4 + $0x118] sm:$0xff]  ;;  %v788_v49 = vld [vmem:[%s1278_s4 + $0x190] sm:$0xff]  ;;  %v409_v50 = vld [vmem:[%s1278_s4 + $0xc8] sm:$0xff] }
  0x1c   : > { %522 = vmatpush.msrb.mxu0 %v415_v26  ;;  %469 = vmatpush.msra.mxu1 %v778_v27  ;;  %v772_v51 = vld [vmem:[%s1278_s4 + $0x110] sm:$0xff]  ;;  %v391_v52 = vld [vmem:[%s1278_s4 + $0x38] sm:$0xff]  ;;  %v787_v53 = vld [vmem:[%s1278_s4 + $0x188] sm:$0xff] }
  0x1d   : > { %490 = vmatpush.msra.mxu2 %v793_v29  ;;  %506 = vmatpush.msra.mxu3 %v395_v36  ;;  %v408_v54 = vld [vmem:[%s1278_s4 + $0xc0] sm:$0xff]  ;;  %v771_v55 = vld [vmem:[%s1278_s4 + $0x108] sm:$0xff]  ;;  %v390_v56 = vld [vmem:[%s1278_s4 + $0x30] sm:$0xff] }
  0x1e   : > { %523 = vmatpush.msrb.mxu0 %v414_v30  ;;  %470 = vmatpush.msra.mxu1 %v777_v31  ;;  %v786_v57 = vld [vmem:[%s1278_s4 + $0x180] sm:$0xff]  ;;  %v407_v58 = vld [vmem:[%s1278_s4 + $0xb8] sm:$0xff]  ;;  %v406_v61 = vld [vmem:[%s1278_s4 + $0xb0] sm:$0xff] }
  0x1f   : > { %491 = vmatpush.msra.mxu2 %v792_v33  ;;  %507 = vmatpush.msra.mxu3 %v394_v40  ;;  %v837_v59 = vld [vmem:[%s1278_s4 + $0x2f8] sm:$0xff]  ;;  %v770_v60 = vld [vmem:[%s1278_s4 + $0x100] sm:$0xff]  ;;  %v836_v63 = vld [vmem:[%s1278_s4 + $0x2f0] sm:$0xff] }
  0x20   : > { %524 = vmatpush.msrb.mxu0 %v413_v34  ;;  %471 = vmatpush.msra.mxu1 %v776_v35  ;;  %v821_v62 = vld [vmem:[%s1278_s4 + $0x278] sm:$0xff]  ;;  %v405_v0 = vld [vmem:[%s1278_s4 + $0xa8] sm:$0xff]  ;;  %v820_v1 = vld [vmem:[%s1278_s4 + $0x270] sm:$0xff] }
  0x21   : > { %492 = vmatpush.msra.mxu2 %v791_v37  ;;  %508 = vmatpush.msra.mxu3 %v393_v44  ;;  %v835_v2 = vld [vmem:[%s1278_s4 + $0x2e8] sm:$0xff]  ;;  %v404_v3 = vld [vmem:[%s1278_s4 + $0xa0] sm:$0xff]  ;;  %v403_v6 = vld [vmem:[%s1278_s4 + $0x98] sm:$0xff] }
  0x22   : > { %525 = vmatpush.msrb.mxu0 %v412_v38  ;;  %472 = vmatpush.msra.mxu1 %v775_v39  ;;  %v819_v4 = vld [vmem:[%s1278_s4 + $0x268] sm:$0xff]  ;;  %v834_v5 = vld [vmem:[%s1278_s4 + $0x2e0] sm:$0xff]  ;;  %v833_v8 = vld [vmem:[%s1278_s4 + $0x2d8] sm:$0xff] }
  0x23   : > { %493 = vmatpush.msra.mxu2 %v790_v41  ;;  %509 = vmatpush.msra.mxu3 %v392_v48  ;;  %v818_v7 = vld [vmem:[%s1278_s4 + $0x260] sm:$0xff]  ;;  %v832_v9 = vld [vmem:[%s1278_s4 + $0x2d0] sm:$0xff]  ;;  %v831_v10 = vld [vmem:[%s1278_s4 + $0x2c8] sm:$0xff] }
  0x24   : > { %526 = vmatpush.msrb.mxu0 %v411_v42  ;;  %473 = vmatpush.msra.mxu1 %v774_v43  ;;  %v389_v11 = vld [vmem:[%s1278_s4 + $0x28] sm:$0xff]  ;;  %v402_v12 = vld [vmem:[%s1278_s4 + $0x90] sm:$0xff]  ;;  %v817_v13 = vld [vmem:[%s1278_s4 + $0x258] sm:$0xff] }
  0x25   : > { %494 = vmatpush.msra.mxu2 %v789_v45  ;;  %510 = vmatpush.msra.mxu3 %v391_v52  ;;  %v830_v14 = vld [vmem:[%s1278_s4 + $0x2c0] sm:$0xff]  ;;  %v401_v16 = vld [vmem:[%s1278_s4 + $0x88] sm:$0xff]  ;;  %v816_v17 = vld [vmem:[%s1278_s4 + $0x250] sm:$0xff] }
  0x26   : > { %527 = vmatpush.msrb.mxu0 %v410_v46  ;;  %474 = vmatpush.msra.mxu1 %v773_v47  ;;  %v388_v15 = vld [vmem:[%s1278_s4 + $0x20] sm:$0xff]  ;;  %v829_v18 = vld [vmem:[%s1278_s4 + $0x2b8] sm:$0xff]  ;;  %v815_v21 = vld [vmem:[%s1278_s4 + $0x248] sm:$0xff] }
  0x27   : > { %495 = vmatpush.msra.mxu2 %v788_v49  ;;  %511 = vmatpush.msra.mxu3 %v390_v56  ;;  %v387_v19 = vld [vmem:[%s1278_s4 + $0x18] sm:$0xff]  ;;  %v400_v20 = vld [vmem:[%s1278_s4 + $0x80] sm:$0xff]  ;;  %v828_v22 = vld [vmem:[%s1278_s4 + $0x2b0] sm:$0xff] }
  0x28   : > { %528 = vmatpush.msrb.mxu0 %v409_v50  ;;  %475 = vmatpush.msra.mxu1 %v772_v51  ;;  %v386_v23 = vld [vmem:[%s1278_s4 + $0x10] sm:$0xff]  ;;  %v814_v24 = vld [vmem:[%s1278_s4 + $0x240] sm:$0xff]  ;;  %v827_v25 = vld [vmem:[%s1278_s4 + $0x2a8] sm:$0xff] }
  0x29   : > { %496 = vmatpush.msra.mxu2 %v787_v53  ;;  %512 = vmatpush.msra.mxu3 %v389_v11  ;;  %v385_v26 = vld [vmem:[%s1278_s4 + $0x8] sm:$0xff]  ;;  %v813_v27 = vld [vmem:[%s1278_s4 + $0x238] sm:$0xff]  ;;  %v826_v28 = vld [vmem:[%s1278_s4 + $0x2a0] sm:$0xff] }
  0x2a   : > { %529 = vmatpush.msrb.mxu0 %v408_v54  ;;  %476 = vmatpush.msra.mxu1 %v771_v55  ;;  %v372_v29 = vld [vmem:[%s324_s19] sm:$0xff]  ;;  %v812_v31 = vld [vmem:[%s1278_s4 + $0x230] sm:$0xff]  ;;  %v825_v32 = vld [vmem:[%s1278_s4 + $0x298] sm:$0xff] }
  0x2b   : > { %497 = vmatpush.msra.mxu2 %v786_v57  ;;  %513 = vmatpush.msra.mxu3 %v388_v15  ;;  %v384_v30 = vld [vmem:[%s1278_s4] sm:$0xff]  ;;  %v375_v33 = vrot.slane %v372_v29, 7  ;;  %v811_v34 = vld [vmem:[%s1278_s4 + $0x228] sm:$0xff]  ;;  %v824_v35 = vld [vmem:[%s1278_s4 + $0x290] sm:$0xff] }
  0x2c   : > { %530 = vmatpush.msrb.mxu0 %v407_v58  ;;  %477 = vmatpush.msra.mxu1 %v770_v60  ;;  %vm1216_vm2 = vmneg %vm379_vm1  ;;  %v810_v39 = vld [vmem:[%s1278_s4 + $0x220] sm:$0xff]  ;;  %v823_v40 = vld [vmem:[%s1278_s4 + $0x288] sm:$0xff] }
  0x2d   : > { %604 = vmatpush.msrb.mxu2 %v837_v59  ;;  %514 = vmatpush.msra.mxu3 %v387_v19  ;;  %v380_v37 = vsel %vm379_vm1, 0.0, %v375_v33  ;;  %v382_v38 = vsel %vm379_vm1, %v375_v33, 0.0  ;;  %v809_v44 = vld [vmem:[%s1278_s4 + $0x218] sm:$0xff]  ;;  %v822_v45 = vld [vmem:[%s1278_s4 + $0x280] sm:$0xff]  ;;  %v808_v46 = vld [vmem:[%s1278_s4 + $0x210] sm:$0xff] }
  0x2e   : > { %531 = vmatpush.msrb.mxu0 %v406_v61  ;;  %584 = vmatpush.msrb.mxu1 %v821_v62  ;;  %v454_v41 = vrot.slane %v380_v37, 1  ;;  %v455_v42 = vrot.slane %v382_v38, 1  ;;  %v576_v47 = vrot.slane %v380_v37, 2  ;;  %v577_v48 = vrot.slane %v382_v38, 2  ;;  %v807_v49 = vld [vmem:[%s1278_s4 + $0x208] sm:$0xff]  ;;  %v806_v50 = vld [vmem:[%s1278_s4 + $0x200] sm:$0xff] }
  0x2f   : > { %605 = vmatpush.msrb.mxu2 %v836_v63  ;;  %515 = vmatpush.msra.mxu3 %v386_v23  ;;  %v848_v52 = vld [vmem:[%s1277_s3] ss:$0 sm:$0xff] }
  0x30   : > { %532 = vmatpush.msrb.mxu0 %v405_v0  ;;  %585 = vmatpush.msrb.mxu1 %v820_v1  ;;  %v456_v43 = vsel %vm453_vm3, %v454_v41, %v455_v42  ;;  %v578_v51 = vsel %vm575_vm4, %v576_v47, %v577_v48 }
  0x31   : > { %606 = vmatpush.msrb.mxu2 %v835_v2  ;;  %516 = vmatpush.msra.mxu3 %v385_v26 }
  0x32   : > { %533 = vmatpush.msrb.mxu0 %v404_v3  ;;  %586 = vmatpush.msrb.mxu1 %v819_v4 }
  0x33   : > { %607 = vmatpush.msrb.mxu2 %v834_v5  ;;  %517 = vmatpush.msra.mxu3 %v384_v30 }
  0x34   : > { %534 = vmatpush.msrb.mxu0 %v403_v6  ;;  %587 = vmatpush.msrb.mxu1 %v818_v7 }
  0x35   : > { %608 = vmatpush.msrb.mxu2 %v833_v8  ;;  %803 = vmatmul.msk.f32.vlgmr.msra.gmra.mxu3 %vm1216_vm2, %v375_v33 }
  0x36   : > { %535 = vmatpush.msrb.mxu0 %v402_v12  ;;  %588 = vmatpush.msrb.mxu1 %v817_v13 }
  0x37   : > { %609 = vmatpush.msrb.mxu2 %v832_v9  ;;  %478 = vmatmul.f32.vlgmr.msra.gmra.mxu1 %v456_v43 }
  0x38   : > { %536 = vmatpush.msrb.mxu0 %v401_v16  ;;  %589 = vmatpush.msrb.mxu1 %v816_v17 }
  0x39   : > { %610 = vmatpush.msrb.mxu2 %v831_v10  ;;  %v849_v10 = vld [vmem:[%s1279_s5] ss:$0 sm:$0xff] }
  0x3a   : > { %537 = vmatpush.msrb.mxu0 %v400_v20  ;;  %590 = vmatpush.msrb.mxu1 %v815_v21 }
  0x3b   : > { %611 = vmatpush.msrb.mxu2 %v830_v14 }
  0x3c   : > { %591 = vmatpush.msrb.mxu1 %v814_v24 }
  0x3d   : > { %612 = vmatpush.msrb.mxu2 %v829_v18 }
  0x3e   : > { %592 = vmatpush.msrb.mxu1 %v813_v27 }
  0x3f   : > { %613 = vmatpush.msrb.mxu2 %v828_v22 }
  0x40   : > { %593 = vmatpush.msrb.mxu1 %v812_v31 }
  0x41   : > { %614 = vmatpush.msrb.mxu2 %v827_v25 }
  0x42   : > { %594 = vmatpush.msrb.mxu1 %v811_v34 }
  0x43   : > { %615 = vmatpush.msrb.mxu2 %v826_v28 }
  0x44   : > { %595 = vmatpush.msrb.mxu1 %v810_v39 }
  0x45   : > { %616 = vmatpush.msrb.mxu2 %v825_v32 }
  0x46   : > { %596 = vmatpush.msrb.mxu1 %v809_v44 }
  0x47   : > { %617 = vmatpush.msrb.mxu2 %v824_v35 }
  0x48   : > { %597 = vmatpush.msrb.mxu1 %v808_v46 }
  0x49   : > { %618 = vmatpush.msrb.mxu2 %v823_v40 }
  0x4a   : > { %598 = vmatpush.msrb.mxu1 %v807_v49 }
  0x4b   : > { %619 = vmatpush.msrb.mxu2 %v822_v45 }
  0x4c   : > { %599 = vmatpush.msrb.mxu1 %v806_v50 }
  0x4d   : > { %600 = vmatmul.f32.vlgmr.msrb.gmra.mxu1 %v578_v51 }
  0x98   : > { %v369_v53 = vpop.f32.mrf.mxu0 }
  0x99   : > { %v370_v54 = vadd.f32 %v848_v52, %v369_v53 }
  0x9b   : > { %v376_v55 = vrot.slane %v370_v54, 7 }
  0x9d   : > { %v381_v56 = vsel %vm379_vm1, 0.0, %v376_v55  ;;  %v383_v57 = vsel %vm379_vm1, %v376_v55, 0.0  ;;  %805 = vmatmul.msk.f32.vlgmr.msrb.gmra.mxu0 %vm1216_vm2, %v376_v55 }
  0x9e   : > { %v457_v58 = vrot.slane %v381_v56, 1  ;;  %v458_v59 = vrot.slane %v383_v57, 1  ;;  %v579_v61 = vrot.slane %v381_v56, 2  ;;  %v580_v62 = vrot.slane %v383_v57, 2 }
  0xa0   : > { %v459_v60 = vsel %vm453_vm3, %v457_v58, %v458_v59  ;;  %v581_v63 = vsel %vm575_vm4, %v579_v61, %v580_v62 }
  0xa1   : > { %498 = vmatmul.f32.vlgmr.msra.gmra.mxu2 %v459_v60 }
  0xa9   : > { %620 = vmatmul.f32.vlgmr.msrb.gmra.mxu2 %v581_v63 }
  0xb4   : > { %v479_v0 = vpop.f32.mrf.mxu1 }
  0xb8   : > { %v519_v3 = vpop.f32.mrf.mxu3 }
  0xca   : > { %v601_v5 = vpop.f32.mrf.mxu1 }
 0x11a   : > { %v539_v6 = vpop.f32.mrf.mxu0 }
 0x124   : > { %v499_v1 = vpop.f32.mrf.mxu2 }
 0x125   : > { %v500_v2 = vadd.f32 %v499_v1, %v479_v0 }
 0x127   : > { %v520_v4 = vadd.f32 %v519_v3, %v500_v2 }
 0x129   : > { %v540_v8 = vadd.f32 %v539_v6, %v520_v4 }
 0x12c   : > { %v621_v7 = vpop.f32.mrf.mxu2 }
 0x12d   : > { %v622_v9 = vadd.f32 %v621_v7, %v601_v5 }
 0x12f   : > { %v624_v11 = vadd.f32 %v622_v9, %v540_v8 }
 0x131   : > { %v629_v12 = vadd.f32 %v849_v10, %v624_v11 }
 0x133   : > { %630 = vst [vmem:[%s328_s18] sm:$0xff] %v629_v12  ;;  %v631_v13 = vrot.slane %v629_v12, 4  ;;  %v638_v14 = vmul.f32 %v629_v12, %v629_v12 }
 0x135   : > { %v632_v15 = vadd.f32 %v631_v13, %v629_v12  ;;  %v639_v16 = vrot.slane %v638_v14, 4 }
 0x137   : > { %v633_v17 = vrot.slane %v632_v15, 2  ;;  %v640_v18 = vadd.f32 %v639_v16, %v638_v14 }
 0x139   : > { %v634_v19 = vadd.f32 %v633_v17, %v632_v15  ;;  %v641_v20 = vrot.slane %v640_v18, 2 }
 0x13b   : > { %v635_v21 = vrot.slane %v634_v19, 1  ;;  %v642_v22 = vadd.f32 %v641_v20, %v640_v18 }
 0x13d   : > { %v636_v23 = vadd.f32 %v635_v21, %v634_v19  ;;  %v643_v24 = vrot.slane %v642_v22, 1 }
 0x13f   : > { %637 = vst [vmem:[%s331_s21] sm:$0x1] %v636_v23  ;;  %v644_v25 = vadd.f32 %v643_v24, %v642_v22 }
 0x141   : > { %645 = vst [vmem:[%s334_s23] sm:$0x1] %v644_v25 }
 0x142 PF: > { %s19_s27 = sadd.s32 1, %s856_s27  }
 0x143   : > { %p16_p4 = scmp.ge.s32.totalorder %s19_s27, 4  }
 0x145   :  { %18 = sbr.rel (!%p16_p4) target bundleno = 1 (0x1), region = 103 }

// kernel: up_forward.3
= control target key start
LH: loop header
LB: loop body
LE: loop exit
PB: predicated region body
PF: predicated region fallthrough
CT: control target
= control target key end

     0   :  { %s658_s24 = smov 0   ;;  %s853_s0 = inlined_call_operand.vmem [shape: f32[2,8,128], index: 0, kind: input, shape index: {}]   ;;  %s854_s1 = inlined_call_operand.vmem [shape: f32[1,128], index: 1, kind: input, shape index: {}]   ;;  %s855_s2 = inlined_call_operand.vmem [shape: f32[1,128], index: 2, kind: input, shape index: {}]   ;;  %s856_s3 = inlined_call_operand.vmem [shape: f32[3,128,128], index: 3, kind: input, shape index: {}]   ;;  %s857_s4 = inlined_call_operand.vmem [shape: f32[1,128], index: 4, kind: input, shape index: {}]   ;;  %s858_s5 = inlined_call_operand.vmem [shape: f32[2,8,128], index: 5, kind: output, shape index: {0}]   ;;  %s859_s6 = inlined_call_operand.vmem [shape: f32[2,1,128], index: 6, kind: output, shape index: {1}]   ;;  %s860_s7 = inlined_call_operand.vmem [shape: f32[2,1,128], index: 7, kind: output, shape index: {2}]  }
   0x1 LB: > { %s556_s25 = sadd.s32 4294967295, %s616_s24   ;;  %p560_p0 = scmp.ge.s32.totalorder %s616_s24, 1  ;;  %s616_s24 = sphi %s658_s24, %s18_s24  }
   0x2   : > { %p241_p1 = scmp.lt.s32.totalorder %s616_s24, 3 }
   0x4   : > { %p242_p2 = pnand %p560_p0, %p241_p1 }
   0x5   : > { %p675_p3 = scmp.lt.s32.totalorder (!%p242_p2), %s556_s25, 1 }
   0x6   : > { %245 = sbr.rel (%p242_p2) target bundleno = 194 (0xc2), region = 40 }
   0xb   : > { %v596_v0 = vld [vmem:[%s856_s3 + $0x178] sm:$0xff]  ;;  %v595_v1 = vld [vmem:[%s856_s3 + $0x170] sm:$0xff]  ;;  %v594_v5 = vld [vmem:[%s856_s3 + $0x168] sm:$0xff]  ;;  %s863_s25 = smov (!%p675_p3, %s556_s25), 1  ;;  %vm306_vm0 = vcmask 1040384   ;;  %vm406_vm1 = vcmask 1045504  }
   0xc   : > { %v578_v2 = vld [vmem:[%s856_s3 + $0xf8] sm:$0xff]  ;;  %411 = vmatpush.msra.mxu2 %v596_v0  ;;  %v577_v4 = vld [vmem:[%s856_s3 + $0xf0] sm:$0xff]  ;;  %v576_v7 = vld [vmem:[%s856_s3 + $0xe8] sm:$0xff]  ;;  %s561_s17 = sshll.u32 %s863_s25, 3  ;;  %vm344_vm2 = vcmask 1046528   ;;  %s287_s13 = scalar_lea.vmem %s859_s6, %s863_s25 }
   0xd   : > { %349 = vmatpush.msra.mxu0 %v578_v2  ;;  %v324_v3 = vld [vmem:[%s856_s3 + $0x78] sm:$0xff]  ;;  %v323_v6 = vld [vmem:[%s856_s3 + $0x70] sm:$0xff]  ;;  %v322_v8 = vld [vmem:[%s856_s3 + $0x68] sm:$0xff]  ;;  %s280_s30 = scalar_lea.vmem %s853_s0, %s561_s17  ;;  %s284_s11 = scalar_lea.vmem %s858_s5, %s561_s17 }
   0xe   : > { %369 = vmatpush.msra.mxu1 %v324_v3  ;;  %412 = vmatpush.msra.mxu2 %v595_v1  ;;  %v593_v9 = vld [vmem:[%s856_s3 + $0x160] sm:$0xff]  ;;  %v592_v12 = vld [vmem:[%s856_s3 + $0x158] sm:$0xff]  ;;  %v591_v15 = vld [vmem:[%s856_s3 + $0x150] sm:$0xff]  ;;  %s290_s15 = scalar_lea.vmem %s860_s7, %s863_s25 }
   0xf   : > { %350 = vmatpush.msra.mxu0 %v577_v4  ;;  %v575_v10 = vld [vmem:[%s856_s3 + $0xe0] sm:$0xff]  ;;  %v574_v13 = vld [vmem:[%s856_s3 + $0xd8] sm:$0xff]  ;;  %v573_v16 = vld [vmem:[%s856_s3 + $0xd0] sm:$0xff] }
  0x10   : > { %370 = vmatpush.msra.mxu1 %v323_v6  ;;  %413 = vmatpush.msra.mxu2 %v594_v5  ;;  %v321_v11 = vld [vmem:[%s856_s3 + $0x60] sm:$0xff]  ;;  %v320_v14 = vld [vmem:[%s856_s3 + $0x58] sm:$0xff]  ;;  %v319_v17 = vld [vmem:[%s856_s3 + $0x50] sm:$0xff] }
  0x11   : > { %351 = vmatpush.msra.mxu0 %v576_v7  ;;  %v590_v18 = vld [vmem:[%s856_s3 + $0x148] sm:$0xff]  ;;  %v589_v21 = vld [vmem:[%s856_s3 + $0x140] sm:$0xff]  ;;  %v588_v23 = vld [vmem:[%s856_s3 + $0x138] sm:$0xff] }
  0x12   : > { %371 = vmatpush.msra.mxu1 %v322_v8  ;;  %414 = vmatpush.msra.mxu2 %v593_v9  ;;  %v572_v19 = vld [vmem:[%s856_s3 + $0xc8] sm:$0xff]  ;;  %v571_v22 = vld [vmem:[%s856_s3 + $0xc0] sm:$0xff]  ;;  %v570_v25 = vld [vmem:[%s856_s3 + $0xb8] sm:$0xff] }
  0x13   : > { %352 = vmatpush.msra.mxu0 %v575_v10  ;;  %v318_v20 = vld [vmem:[%s856_s3 + $0x48] sm:$0xff]  ;;  %v317_v24 = vld [vmem:[%s856_s3 + $0x40] sm:$0xff]  ;;  %v316_v26 = vld [vmem:[%s856_s3 + $0x38] sm:$0xff] }
  0x14   : > { %372 = vmatpush.msra.mxu1 %v321_v11  ;;  %415 = vmatpush.msra.mxu2 %v592_v12  ;;  %v291_v27 = vld [vmem:[%s280_s30] sm:$0xff]  ;;  %v587_v29 = vld [vmem:[%s856_s3 + $0x130] sm:$0xff]  ;;  %v586_v34 = vld [vmem:[%s856_s3 + $0x128] sm:$0xff] }
  0x15   : > { %353 = vmatpush.msra.mxu0 %v574_v13  ;;  %v607_v28 = vld [vmem:[%s854_s1] ss:$0 sm:$0xff]  ;;  %v569_v30 = vld [vmem:[%s856_s3 + $0xb0] sm:$0xff]  ;;  %v568_v35 = vld [vmem:[%s856_s3 + $0xa8] sm:$0xff] }
  0x16   : > { %373 = vmatpush.msra.mxu1 %v320_v14  ;;  %416 = vmatpush.msra.mxu2 %v591_v15  ;;  %v608_v31 = vld [vmem:[%s855_s2] ss:$0 sm:$0xff]  ;;  %v315_v32 = vld [vmem:[%s856_s3 + $0x30] sm:$0xff]  ;;  %v296_v33 = vmul.f32 %v607_v28, %v291_v27  ;;  %v314_v36 = vld [vmem:[%s856_s3 + $0x28] sm:$0xff] }
  0x17   : > { %354 = vmatpush.msra.mxu0 %v573_v16  ;;  %v585_v38 = vld [vmem:[%s856_s3 + $0x120] sm:$0xff]  ;;  %v584_v42 = vld [vmem:[%s856_s3 + $0x118] sm:$0xff]  ;;  %v583_v46 = vld [vmem:[%s856_s3 + $0x110] sm:$0xff] }
  0x18   : > { %374 = vmatpush.msra.mxu1 %v319_v17  ;;  %417 = vmatpush.msra.mxu2 %v590_v18  ;;  %v301_v37 = vadd.f32 %v608_v31, %v296_v33  ;;  %v567_v39 = vld [vmem:[%s856_s3 + $0xa0] sm:$0xff]  ;;  %v566_v43 = vld [vmem:[%s856_s3 + $0x98] sm:$0xff]  ;;  %v565_v47 = vld [vmem:[%s856_s3 + $0x90] sm:$0xff] }
  0x19   : > { %355 = vmatpush.msra.mxu0 %v572_v19  ;;  %v313_v40 = vld [vmem:[%s856_s3 + $0x20] sm:$0xff]  ;;  %v312_v44 = vld [vmem:[%s856_s3 + $0x18] sm:$0xff]  ;;  %v311_v48 = vld [vmem:[%s856_s3 + $0x10] sm:$0xff] }
  0x1a   : > { %375 = vmatpush.msra.mxu1 %v318_v20  ;;  %418 = vmatpush.msra.mxu2 %v589_v21  ;;  %v302_v41 = vmax.f32 %v301_v37, 0.0  ;;  %v582_v51 = vld [vmem:[%s856_s3 + $0x108] sm:$0xff]  ;;  %v581_v58 = vld [vmem:[%s856_s3 + $0x100] sm:$0xff]  ;;  %vm579_vm3 = vmneg %vm306_vm0 }
  0x1b   : > { %356 = vmatpush.msra.mxu0 %v571_v22  ;;  %v564_v54 = vld [vmem:[%s856_s3 + $0x88] sm:$0xff]  ;;  %v563_v59 = vld [vmem:[%s856_s3 + $0x80] sm:$0xff] }
  0x1c   : > { %376 = vmatpush.msra.mxu1 %v317_v24  ;;  %419 = vmatpush.msra.mxu2 %v588_v23  ;;  %v304_v45 = vrot.slane %v302_v41, 7  ;;  %v310_v57 = vld [vmem:[%s856_s3 + $0x8] sm:$0xff]  ;;  %v309_v61 = vld [vmem:[%s856_s3] sm:$0xff] }
  0x1d   : > { %357 = vmatpush.msra.mxu0 %v570_v25  ;;  %v609_v2 = vld [vmem:[%s857_s4] ss:$0 sm:$0xff] }
  0x1e   : > { %377 = vmatpush.msra.mxu1 %v316_v26  ;;  %420 = vmatpush.msra.mxu2 %v587_v29  ;;  %v307_v49 = vsel %vm306_vm0, 0.0, %v304_v45  ;;  %v308_v50 = vsel %vm306_vm0, %v304_v45, 0.0 }
  0x1f   : > { %358 = vmatpush.msra.mxu0 %v569_v30  ;;  %v407_v52 = vrot.slane %v307_v49, 2  ;;  %v408_v53 = vrot.slane %v308_v50, 2  ;;  %v345_v55 = vrot.slane %v307_v49, 1  ;;  %v346_v56 = vrot.slane %v308_v50, 1 }
  0x20   : > { %378 = vmatpush.msra.mxu1 %v315_v32  ;;  %421 = vmatpush.msra.mxu2 %v586_v34 }
  0x21   : > { %359 = vmatpush.msra.mxu0 %v568_v35  ;;  %v409_v60 = vsel %vm406_vm1, %v407_v52, %v408_v53  ;;  %v347_v62 = vsel %vm344_vm2, %v345_v55, %v346_v56 }
  0x22   : > { %379 = vmatpush.msra.mxu1 %v314_v36  ;;  %422 = vmatpush.msra.mxu2 %v585_v38 }
  0x23   : > { %360 = vmatpush.msra.mxu0 %v567_v39 }
  0x24   : > { %380 = vmatpush.msra.mxu1 %v313_v40  ;;  %423 = vmatpush.msra.mxu2 %v584_v42 }
  0x25   : > { %361 = vmatpush.msra.mxu0 %v566_v43 }
  0x26   : > { %381 = vmatpush.msra.mxu1 %v312_v44  ;;  %424 = vmatpush.msra.mxu2 %v583_v46 }
  0x27   : > { %362 = vmatpush.msra.mxu0 %v565_v47 }
  0x28   : > { %382 = vmatpush.msra.mxu1 %v311_v48  ;;  %425 = vmatpush.msra.mxu2 %v582_v51 }
  0x29   : > { %363 = vmatpush.msra.mxu0 %v564_v54 }
  0x2a   : > { %383 = vmatpush.msra.mxu1 %v310_v57  ;;  %426 = vmatpush.msra.mxu2 %v581_v58 }
  0x2b   : > { %364 = vmatpush.msra.mxu0 %v563_v59  ;;  %427 = vmatmul.f32.vlgmr.msra.gmra.mxu2 %v409_v60 }
  0x2c   : > { %384 = vmatpush.msra.mxu1 %v309_v61  ;;  %365 = vmatmul.f32.vlgmr.msra.gmra.mxu0 %v347_v62 }
  0x2d   : > { %580 = vmatmul.msk.f32.vlgmr.msra.gmra.mxu1 %vm579_vm3, %v304_v45 }
  0xa9   : > { %v366_v63 = vpop.f32.mrf.mxu0 }
  0xaa   : > { %v386_v0 = vpop.f32.mrf.mxu1 }
  0xab   : > { %v387_v1 = vadd.f32 %v386_v0, %v366_v63 }
  0xae   : > { %v428_v3 = vpop.f32.mrf.mxu2 }
  0xaf   : > { %v431_v4 = vadd.f32 %v428_v3, %v387_v1 }
  0xb1   : > { %v436_v5 = vadd.f32 %v609_v2, %v431_v4 }
  0xb3   : > { %437 = vst [vmem:[%s284_s11] sm:$0xff] %v436_v5  ;;  %v438_v6 = vrot.slane %v436_v5, 4  ;;  %v445_v7 = vmul.f32 %v436_v5, %v436_v5 }
  0xb5   : > { %v439_v8 = vadd.f32 %v438_v6, %v436_v5  ;;  %v446_v9 = vrot.slane %v445_v7, 4 }
  0xb7   : > { %v440_v10 = vrot.slane %v439_v8, 2  ;;  %v447_v11 = vadd.f32 %v446_v9, %v445_v7 }
  0xb9   : > { %v441_v12 = vadd.f32 %v440_v10, %v439_v8  ;;  %v448_v13 = vrot.slane %v447_v11, 2 }
  0xbb   : > { %v442_v14 = vrot.slane %v441_v12, 1  ;;  %v449_v15 = vadd.f32 %v448_v13, %v447_v11 }
  0xbd   : > { %v443_v16 = vadd.f32 %v442_v14, %v441_v12  ;;  %v450_v17 = vrot.slane %v449_v15, 1 }
  0xbf   : > { %444 = vst [vmem:[%s287_s13] sm:$0x1] %v443_v16  ;;  %v451_v18 = vadd.f32 %v450_v17, %v449_v15 }
  0xc1   : > { %452 = vst [vmem:[%s290_s15] sm:$0x1] %v451_v18 }
  0xc2 PF: > { %s18_s24 = sadd.s32 1, %s616_s24  }
  0xc3   : > { %p15_p4 = scmp.ge.s32.totalorder %s18_s24, 4  }
  0xc5   :  { %17 = sbr.rel (!%p15_p4) target bundleno = 1 (0x1), region = 96 }

</bundles_post_ra>
